<compile_context>
chip_gen: v6e
topology: v6e:2x2x1
jax: 0.10.0
libtpu: 0.0.40
codegen_flags: <defaults>
</compile_context>

<pallas_src>
import math
import jax
import jax.numpy as jnp
from jax.experimental import pallas as pl
from jax.experimental.pallas import tpu as pltpu


# ----------------------------- Pallas kernel -------------------------------

def blockhla8_kernel(a_ref, x_ref, cw0_ref, cw_ref, cb_ref,
                     lw1_ref, lw2_ref, lb_ref, o_ref):
    f32 = jnp.float32
    bf16 = jnp.bfloat16

    a_bf = a_ref[...]  # already bf16 (cast in wrapper: halves A_hat DMA bytes)

    def conv(x_bf, c):
        # GCN conv: A_hat @ x @ W + b   (bf16 operands, f32 MXU accumulation)
        b = cb_ref[pl.ds(c, 1), :]
        if c == 0:
            # first conv: aggregate first so the N^2 matmul contracts the
            # (originally) narrower in_dim.
            ax = jnp.dot(a_bf, x_bf, preferred_element_type=f32)
            y = jnp.dot(ax.astype(bf16), cw0_ref[...],
                        preferred_element_type=f32)
        else:
            xw = jnp.dot(x_bf, cw_ref[c - 1], preferred_element_type=f32)
            y = jnp.dot(a_bf, xw.astype(bf16), preferred_element_type=f32)
        return y + b

    def combine(x1_bf, x2_bf, l):
        # relu(cat([x1, x2], -1) @ lin_w + lin_b) with the concat removed:
        #   relu(x1 @ W1 + x2 @ W2 + b)
        y = jnp.dot(x1_bf, lw1_ref[l], preferred_element_type=f32)
        y = y + jnp.dot(x2_bf, lw2_ref[l], preferred_element_type=f32)
        return jnp.maximum(y + lb_ref[pl.ds(l, 1), :], 0.0)

    def block(x_bf, b_idx):
        # Block.forward: conv1 -> conv2 -> (dropout = identity) -> lin + relu
        x1 = conv(x_bf, 2 * b_idx)
        x1_bf = x1.astype(bf16)            # one cast, two consumers
        x2 = conv(x1_bf, 2 * b_idx + 1)
        return combine(x1_bf, x2.astype(bf16), b_idx)

    x0_bf = x_ref[...].astype(bf16)
    # BlockHLA4 #1
    h11 = block(x0_bf, 0)
    h11_bf = h11.astype(bf16)
    h12 = block(h11_bf, 1)
    g1 = combine(h11_bf, h12.astype(bf16), 4)
    g1_bf = g1.astype(bf16)
    # BlockHLA4 #2
    h21 = block(g1_bf, 2)
    h21_bf = h21.astype(bf16)
    h22 = block(h21_bf, 3)
    g2 = combine(h21_bf, h22.astype(bf16), 5)
    # BlockHLA8 head
    o_ref[...] = combine(g1_bf, g2.astype(bf16), 6)


# --------------------------- parameter handling -----------------------------

def glorot(key, fan_in, fan_out):
    stdv = math.sqrt(6.0 / (fan_in + fan_out))
    return jax.random.uniform(key, (fan_in, fan_out), jnp.float32, -stdv, stdv)


def init_block_params(key, in_dim, out_dim, num_layers=2):
    k1, k2, k3 = jax.random.split(key, 3)
    return {
        "conv1_w": glorot(k1, in_dim, out_dim),
        "conv1_b": jnp.zeros((out_dim,), jnp.float32),
        "conv2_w": glorot(k2, out_dim, out_dim),
        "conv2_b": jnp.zeros((out_dim,), jnp.float32),
        # torch Linear(num_layers*out_dim, out_dim) weight, stored transposed
        "lin_w": glorot(k3, num_layers * out_dim, out_dim),
        "lin_b": jnp.zeros((out_dim,), jnp.float32),
    }


def init_blockhla4_params(key, in_dim, out_dim, num_blocks=2):
    kb1, kb2, kl = jax.random.split(key, 3)
    return {
        "block1": init_block_params(kb1, in_dim, out_dim, num_blocks),
        "block2": init_block_params(kb2, out_dim, out_dim, num_blocks),
        "lin_w": glorot(kl, num_blocks * out_dim, out_dim),
        "lin_b": jnp.zeros((out_dim,), jnp.float32),
    }


def init_blockhla8_params(key, in_dim, out_dim, num_blocks=2):
    kb1, kb2, kl = jax.random.split(key, 3)
    return {
        "block1": init_blockhla4_params(kb1, in_dim, out_dim, num_blocks),
        "block2": init_blockhla4_params(kb2, out_dim, out_dim, num_blocks),
        "lin_w": glorot(kl, num_blocks * out_dim, out_dim),
        "lin_b": jnp.zeros((out_dim,), jnp.float32),
    }


def _pad2(x, r, c):
    return jnp.pad(x, ((0, r - x.shape[0]), (0, c - x.shape[1])))


def _pad1(x, c):
    return jnp.pad(x, ((0, c - x.shape[0]),))


def pack_params(params, dout, dp, dpi):
    """Stack/pad weights so the fused kernel takes only a handful of refs.

    Matmul weights are shipped as bf16 (halves DMA, no in-kernel cast);
    biases stay f32 (added to the f32 MXU accumulators).
    """
    bf16 = jnp.bfloat16
    blocks = [params["block1"]["block1"], params["block1"]["block2"],
              params["block2"]["block1"], params["block2"]["block2"]]
    lins = [(b["lin_w"], b["lin_b"]) for b in blocks]
    lins += [(params["block1"]["lin_w"], params["block1"]["lin_b"]),
             (params["block2"]["lin_w"], params["block2"]["lin_b"]),
             (params["lin_w"], params["lin_b"])]

    conv_ws, conv_bs = [], []
    for b in blocks:
        conv_ws += [b["conv1_w"], b["conv2_w"]]
        conv_bs += [b["conv1_b"], b["conv2_b"]]

    cw0 = _pad2(conv_ws[0], dpi, dp).astype(bf16)                  # (dpi, dp)
    cw = jnp.stack([_pad2(w, dp, dp) for w in conv_ws[1:]]).astype(bf16)
    cb = jnp.stack([_pad1(b, dp) for b in conv_bs])                # (8, dp) f32
    lw1 = jnp.stack([_pad2(w[:dout], dp, dp) for w, _ in lins]).astype(bf16)
    lw2 = jnp.stack([_pad2(w[dout:], dp, dp) for w, _ in lins]).astype(bf16)
    lb = jnp.stack([_pad1(b, dp) for _, b in lins])                # (7, dp) f32
    return cw0, cw, cb, lw1, lw2, lb


# ----------------------------- forward (glue) -------------------------------

def build_norm_adj(edge_index, num_nodes):
    src, dst = edge_index[0], edge_index[1]
    a = jnp.zeros((num_nodes, num_nodes), jnp.float32).at[dst, src].set(1.0)
    a = jnp.minimum(a + jnp.eye(num_nodes, dtype=jnp.float32), 1.0)
    deg = a.sum(axis=-1)
    dinv = 1.0 / jnp.sqrt(jnp.maximum(deg, 1.0))
    return a * dinv[:, None] * dinv[None, :]


@jax.jit
def blockhla8_forward(params, x, edge_index):
    n, in_dim = x.shape
    dout = params["lin_b"].shape[0]
    dp = ((dout + 127) // 128) * 128     # lane-dense hidden feature width
    dpi = ((in_dim + 127) // 128) * 128  # lane-dense input feature width

    a_hat = build_norm_adj(edge_index, n).astype(jnp.bfloat16)
    x_pad = jnp.pad(x, ((0, 0), (0, dpi - in_dim)))
    cw0, cw, cb, lw1, lw2, lb = pack_params(params, dout, dp, dpi)

    out = pl.pallas_call(
        blockhla8_kernel,
        out_shape=jax.ShapeDtypeStruct((n, dp), jnp.float32),
        grid=(1,),
        in_specs=[
            pl.BlockSpec((n, n), lambda i: (0, 0)),
            pl.BlockSpec((n, dpi), lambda i: (0, 0)),
            pl.BlockSpec((dpi, dp), lambda i: (0, 0)),
            pl.BlockSpec((7, dp, dp), lambda i: (0, 0, 0)),
            pl.BlockSpec((8, dp), lambda i: (0, 0)),
            pl.BlockSpec((7, dp, dp), lambda i: (0, 0, 0)),
            pl.BlockSpec((7, dp, dp), lambda i: (0, 0, 0)),
            pl.BlockSpec((7, dp), lambda i: (0, 0)),
        ],
        out_specs=pl.BlockSpec((n, dp), lambda i: (0, 0)),
        compiler_params=pltpu.CompilerParams(
            dimension_semantics=("arbitrary",),
            vmem_limit_bytes=64 * 1024 * 1024,
        ),
    )(a_hat, x_pad, cw0, cw, cb, lw1, lw2, lb)
    return out[:, :dout]


# ------------------------- pure-JAX reference -------------------------------

def _conv_ref(a, x, w, b, agg_first):
    bf, f32 = jnp.bfloat16, jnp.float32
    a_bf, x_bf, w_bf = a.astype(bf), x.astype(bf), w.astype(bf)
    if agg_first:
        ax = jnp.dot(a_bf, x_bf, preferred_element_type=f32)
        y = jnp.dot(ax.astype(bf), w_bf, preferred_element_type=f32)
    else:
        xw = jnp.dot(x_bf, w_bf, preferred_element_type=f32)
        y = jnp.dot(a_bf, xw.astype(bf), preferred_element_type=f32)
    return y + b[None, :]


def _combine_ref(x1, x2, w, b):
    bf, f32 = jnp.bfloat16, jnp.float32
    d = w.shape[1]
    y = jnp.dot(x1.astype(bf), w[:d].astype(bf), preferred_element_type=f32)
    y = y + jnp.dot(x2.astype(bf), w[d:].astype(bf), preferred_element_type=f32)
    return jnp.maximum(y + b[None, :], 0.0)


def _block_ref(a, x, p, first):
    x1 = _conv_ref(a, x, p["conv1_w"], p["conv1_b"], agg_first=first)
    x2 = _conv_ref(a, x1, p["conv2_w"], p["conv2_b"], agg_first=False)
    return _combine_ref(x1, x2, p["lin_w"], p["lin_b"])


def _hla4_ref(a, x, p, first):
    x1 = _block_ref(a, x, p["block1"], first)
    x2 = _block_ref(a, x1, p["block2"], False)
    return _combine_ref(x1, x2, p["lin_w"], p["lin_b"])


def blockhla8_ref(params, x, edge_index):
    a = build_norm_adj(edge_index, x.shape[0])
    x1 = _hla4_ref(a, x, params["block1"], True)
    x2 = _hla4_ref(a, x1, params["block2"], False)
    return _combine_ref(x1, x2, params["lin_w"], params["lin_b"])


# --------------------------------- main --------------------------------------

if __name__ == "__main__":
    key = jax.random.PRNGKey(0)
    k_param, k_x, k_e = jax.random.split(key, 3)

    num_nodes = 8
    in_dim = 16
    out_dim = 32
    num_edges = 16

    params = init_blockhla8_params(k_param, in_dim, out_dim, num_blocks=2)

    x = jax.random.normal(k_x, (num_nodes, in_dim), jnp.float32)
    edge_index = jax.random.randint(k_e, (2, num_edges), 0, num_nodes,
                                    dtype=jnp.int32)

    out = blockhla8_forward(params, x, edge_index)
    jax.block_until_ready(out)

    assert out.shape == (num_nodes, out_dim), out.shape
    assert out.dtype == jnp.float32

    ref = blockhla8_ref(params, x, edge_index)
    max_err = float(jnp.max(jnp.abs(out - ref)))
    assert jnp.allclose(out, ref, rtol=2e-2, atol=2e-2), max_err

    print("KERNEL_OK")
</pallas_src>

<mosaic_0001>
module attributes {stable_mosaic.version = 11 : i64} {
  func.func @blockhla8_kernel(%arg0: i32, %arg1: memref<8x8xbf16, #tpu.memory_space<vmem>>, %arg2: memref<8x128xf32, #tpu.memory_space<vmem>>, %arg3: memref<128x128xbf16, #tpu.memory_space<vmem>>, %arg4: memref<7x128x128xbf16, #tpu.memory_space<vmem>>, %arg5: memref<8x128xf32, #tpu.memory_space<vmem>>, %arg6: memref<7x128x128xbf16, #tpu.memory_space<vmem>>, %arg7: memref<7x128x128xbf16, #tpu.memory_space<vmem>>, %arg8: memref<7x128xf32, #tpu.memory_space<vmem>>, %arg9: memref<8x128xf32, #tpu.memory_space<vmem>>) attributes {dimension_semantics = [#tpu.dimension_semantics<arbitrary>], iteration_bounds = array<i64: 1>, scalar_prefetch = 0 : i64, scratch_operands = 0 : i64, tpu.core_type = #tpu.core_type<tc>, window_params = [{pipeline_mode = #tpu.pipeline_mode<synchronous>, transform_indices = @transform_0, window_bounds = array<i64: 8, 8>}, {pipeline_mode = #tpu.pipeline_mode<synchronous>, transform_indices = @transform_1, window_bounds = array<i64: 8, 128>}, {pipeline_mode = #tpu.pipeline_mode<synchronous>, transform_indices = @transform_2, window_bounds = array<i64: 128, 128>}, {pipeline_mode = #tpu.pipeline_mode<synchronous>, transform_indices = @transform_3, window_bounds = array<i64: 7, 128, 128>}, {pipeline_mode = #tpu.pipeline_mode<synchronous>, transform_indices = @transform_4, window_bounds = array<i64: 8, 128>}, {pipeline_mode = #tpu.pipeline_mode<synchronous>, transform_indices = @transform_5, window_bounds = array<i64: 7, 128, 128>}, {pipeline_mode = #tpu.pipeline_mode<synchronous>, transform_indices = @transform_6, window_bounds = array<i64: 7, 128, 128>}, {pipeline_mode = #tpu.pipeline_mode<synchronous>, transform_indices = @transform_7, window_bounds = array<i64: 7, 128>}, {pipeline_mode = #tpu.pipeline_mode<synchronous>, transform_indices = @transform_8, window_bounds = array<i64: 8, 128>}]} {
    %c0 = arith.constant 0 : index
    %c0_0 = arith.constant 0 : index
    %0 = vector.load %arg1[%c0, %c0_0] : memref<8x8xbf16, #tpu.memory_space<vmem>>, vector<8x8xbf16>
    %c0_1 = arith.constant 0 : index
    %c0_2 = arith.constant 0 : index
    %1 = vector.load %arg2[%c0_1, %c0_2] : memref<8x128xf32, #tpu.memory_space<vmem>>, vector<8x128xf32>
    %2 = arith.truncf %1 : vector<8x128xf32> to vector<8x128xbf16>
    %c0_3 = arith.constant 0 : index
    %c0_4 = arith.constant 0 : index
    %3 = vector.load %arg5[%c0_3, %c0_4] : memref<8x128xf32, #tpu.memory_space<vmem>>, vector<1x128xf32>
    %cst = arith.constant dense<0.000000e+00> : vector<8x128xf32>
    %4 = tpu.matmul %0, %2, %cst {dimension_numbers = #tpu.dot_dimension_numbers<[1], [0], [0], [1], [0, 0, 1, 1], [], []>} : vector<8x8xbf16>, vector<8x128xbf16>, vector<8x128xf32> -> vector<8x128xf32>
    %5 = arith.truncf %4 : vector<8x128xf32> to vector<8x128xbf16>
    %c0_5 = arith.constant 0 : index
    %c0_6 = arith.constant 0 : index
    %6 = vector.load %arg3[%c0_5, %c0_6] : memref<128x128xbf16, #tpu.memory_space<vmem>>, vector<128x128xbf16>
    %cst_7 = arith.constant dense<0.000000e+00> : vector<8x128xf32>
    %7 = tpu.matmul %5, %6, %cst_7 {dimension_numbers = #tpu.dot_dimension_numbers<[1], [0], [0], [1], [0, 0, 1, 1], [], []>} : vector<8x128xbf16>, vector<128x128xbf16>, vector<8x128xf32> -> vector<8x128xf32>
    %8 = vector.broadcast %3 : vector<1x128xf32> to vector<8x128xf32>
    %9 = arith.addf %7, %8 : vector<8x128xf32>
    %10 = arith.truncf %9 : vector<8x128xf32> to vector<8x128xbf16>
    %c1 = arith.constant 1 : index
    %c0_8 = arith.constant 0 : index
    %11 = vector.load %arg5[%c1, %c0_8] : memref<8x128xf32, #tpu.memory_space<vmem>>, vector<1x128xf32>
    %c0_9 = arith.constant 0 : index
    %c0_10 = arith.constant 0 : index
    %c0_11 = arith.constant 0 : index
    %12 = vector.load %arg4[%c0_9, %c0_10, %c0_11] : memref<7x128x128xbf16, #tpu.memory_space<vmem>>, vector<1x128x128xbf16>
    %13 = vector.shape_cast %12 : vector<1x128x128xbf16> to vector<128x128xbf16>
    %cst_12 = arith.constant dense<0.000000e+00> : vector<8x128xf32>
    %14 = tpu.matmul %10, %13, %cst_12 {dimension_numbers = #tpu.dot_dimension_numbers<[1], [0], [0], [1], [0, 0, 1, 1], [], []>} : vector<8x128xbf16>, vector<128x128xbf16>, vector<8x128xf32> -> vector<8x128xf32>
    %15 = arith.truncf %14 : vector<8x128xf32> to vector<8x128xbf16>
    %cst_13 = arith.constant dense<0.000000e+00> : vector<8x128xf32>
    %16 = tpu.matmul %0, %15, %cst_13 {dimension_numbers = #tpu.dot_dimension_numbers<[1], [0], [0], [1], [0, 0, 1, 1], [], []>} : vector<8x8xbf16>, vector<8x128xbf16>, vector<8x128xf32> -> vector<8x128xf32>
    %17 = vector.broadcast %11 : vector<1x128xf32> to vector<8x128xf32>
    %18 = arith.addf %16, %17 : vector<8x128xf32>
    %19 = arith.truncf %18 : vector<8x128xf32> to vector<8x128xbf16>
    %c0_14 = arith.constant 0 : index
    %c0_15 = arith.constant 0 : index
    %c0_16 = arith.constant 0 : index
    %20 = vector.load %arg6[%c0_14, %c0_15, %c0_16] : memref<7x128x128xbf16, #tpu.memory_space<vmem>>, vector<1x128x128xbf16>
    %21 = vector.shape_cast %20 : vector<1x128x128xbf16> to vector<128x128xbf16>
    %cst_17 = arith.constant dense<0.000000e+00> : vector<8x128xf32>
    %22 = tpu.matmul %10, %21, %cst_17 {dimension_numbers = #tpu.dot_dimension_numbers<[1], [0], [0], [1], [0, 0, 1, 1], [], []>} : vector<8x128xbf16>, vector<128x128xbf16>, vector<8x128xf32> -> vector<8x128xf32>
    %c0_18 = arith.constant 0 : index
    %c0_19 = arith.constant 0 : index
    %c0_20 = arith.constant 0 : index
    %23 = vector.load %arg7[%c0_18, %c0_19, %c0_20] : memref<7x128x128xbf16, #tpu.memory_space<vmem>>, vector<1x128x128xbf16>
    %24 = vector.shape_cast %23 : vector<1x128x128xbf16> to vector<128x128xbf16>
    %cst_21 = arith.constant dense<0.000000e+00> : vector<8x128xf32>
    %25 = tpu.matmul %19, %24, %cst_21 {dimension_numbers = #tpu.dot_dimension_numbers<[1], [0], [0], [1], [0, 0, 1, 1], [], []>} : vector<8x128xbf16>, vector<128x128xbf16>, vector<8x128xf32> -> vector<8x128xf32>
    %26 = arith.addf %22, %25 : vector<8x128xf32>
    %c0_22 = arith.constant 0 : index
    %c0_23 = arith.constant 0 : index
    %27 = vector.load %arg8[%c0_22, %c0_23] : memref<7x128xf32, #tpu.memory_space<vmem>>, vector<1x128xf32>
    %28 = vector.broadcast %27 : vector<1x128xf32> to vector<8x128xf32>
    %29 = arith.addf %26, %28 : vector<8x128xf32>
    %cst_24 = arith.constant 0.000000e+00 : f32
    %30 = vector.broadcast %cst_24 : f32 to vector<8x128xf32>
    %31 = arith.maximumf %29, %30 : vector<8x128xf32>
    %32 = arith.truncf %31 : vector<8x128xf32> to vector<8x128xbf16>
    %c2 = arith.constant 2 : index
    %c0_25 = arith.constant 0 : index
    %33 = vector.load %arg5[%c2, %c0_25] : memref<8x128xf32, #tpu.memory_space<vmem>>, vector<1x128xf32>
    %c1_26 = arith.constant 1 : index
    %c0_27 = arith.constant 0 : index
    %c0_28 = arith.constant 0 : index
    %34 = vector.load %arg4[%c1_26, %c0_27, %c0_28] : memref<7x128x128xbf16, #tpu.memory_space<vmem>>, vector<1x128x128xbf16>
    %35 = vector.shape_cast %34 : vector<1x128x128xbf16> to vector<128x128xbf16>
    %cst_29 = arith.constant dense<0.000000e+00> : vector<8x128xf32>
    %36 = tpu.matmul %32, %35, %cst_29 {dimension_numbers = #tpu.dot_dimension_numbers<[1], [0], [0], [1], [0, 0, 1, 1], [], []>} : vector<8x128xbf16>, vector<128x128xbf16>, vector<8x128xf32> -> vector<8x128xf32>
    %37 = arith.truncf %36 : vector<8x128xf32> to vector<8x128xbf16>
    %cst_30 = arith.constant dense<0.000000e+00> : vector<8x128xf32>
    %38 = tpu.matmul %0, %37, %cst_30 {dimension_numbers = #tpu.dot_dimension_numbers<[1], [0], [0], [1], [0, 0, 1, 1], [], []>} : vector<8x8xbf16>, vector<8x128xbf16>, vector<8x128xf32> -> vector<8x128xf32>
    %39 = vector.broadcast %33 : vector<1x128xf32> to vector<8x128xf32>
    %40 = arith.addf %38, %39 : vector<8x128xf32>
    %41 = arith.truncf %40 : vector<8x128xf32> to vector<8x128xbf16>
    %c3 = arith.constant 3 : index
    %c0_31 = arith.constant 0 : index
    %42 = vector.load %arg5[%c3, %c0_31] : memref<8x128xf32, #tpu.memory_space<vmem>>, vector<1x128xf32>
    %c2_32 = arith.constant 2 : index
    %c0_33 = arith.constant 0 : index
    %c0_34 = arith.constant 0 : index
    %43 = vector.load %arg4[%c2_32, %c0_33, %c0_34] : memref<7x128x128xbf16, #tpu.memory_space<vmem>>, vector<1x128x128xbf16>
    %44 = vector.shape_cast %43 : vector<1x128x128xbf16> to vector<128x128xbf16>
    %cst_35 = arith.constant dense<0.000000e+00> : vector<8x128xf32>
    %45 = tpu.matmul %41, %44, %cst_35 {dimension_numbers = #tpu.dot_dimension_numbers<[1], [0], [0], [1], [0, 0, 1, 1], [], []>} : vector<8x128xbf16>, vector<128x128xbf16>, vector<8x128xf32> -> vector<8x128xf32>
    %46 = arith.truncf %45 : vector<8x128xf32> to vector<8x128xbf16>
    %cst_36 = arith.constant dense<0.000000e+00> : vector<8x128xf32>
    %47 = tpu.matmul %0, %46, %cst_36 {dimension_numbers = #tpu.dot_dimension_numbers<[1], [0], [0], [1], [0, 0, 1, 1], [], []>} : vector<8x8xbf16>, vector<8x128xbf16>, vector<8x128xf32> -> vector<8x128xf32>
    %48 = vector.broadcast %42 : vector<1x128xf32> to vector<8x128xf32>
    %49 = arith.addf %47, %48 : vector<8x128xf32>
    %50 = arith.truncf %49 : vector<8x128xf32> to vector<8x128xbf16>
    %c1_37 = arith.constant 1 : index
    %c0_38 = arith.constant 0 : index
    %c0_39 = arith.constant 0 : index
    %51 = vector.load %arg6[%c1_37, %c0_38, %c0_39] : memref<7x128x128xbf16, #tpu.memory_space<vmem>>, vector<1x128x128xbf16>
    %52 = vector.shape_cast %51 : vector<1x128x128xbf16> to vector<128x128xbf16>
    %cst_40 = arith.constant dense<0.000000e+00> : vector<8x128xf32>
    %53 = tpu.matmul %41, %52, %cst_40 {dimension_numbers = #tpu.dot_dimension_numbers<[1], [0], [0], [1], [0, 0, 1, 1], [], []>} : vector<8x128xbf16>, vector<128x128xbf16>, vector<8x128xf32> -> vector<8x128xf32>
    %c1_41 = arith.constant 1 : index
    %c0_42 = arith.constant 0 : index
    %c0_43 = arith.constant 0 : index
    %54 = vector.load %arg7[%c1_41, %c0_42, %c0_43] : memref<7x128x128xbf16, #tpu.memory_space<vmem>>, vector<1x128x128xbf16>
    %55 = vector.shape_cast %54 : vector<1x128x128xbf16> to vector<128x128xbf16>
    %cst_44 = arith.constant dense<0.000000e+00> : vector<8x128xf32>
    %56 = tpu.matmul %50, %55, %cst_44 {dimension_numbers = #tpu.dot_dimension_numbers<[1], [0], [0], [1], [0, 0, 1, 1], [], []>} : vector<8x128xbf16>, vector<128x128xbf16>, vector<8x128xf32> -> vector<8x128xf32>
    %57 = arith.addf %53, %56 : vector<8x128xf32>
    %c1_45 = arith.constant 1 : index
    %c0_46 = arith.constant 0 : index
    %58 = vector.load %arg8[%c1_45, %c0_46] : memref<7x128xf32, #tpu.memory_space<vmem>>, vector<1x128xf32>
    %59 = vector.broadcast %58 : vector<1x128xf32> to vector<8x128xf32>
    %60 = arith.addf %57, %59 : vector<8x128xf32>
    %cst_47 = arith.constant 0.000000e+00 : f32
    %61 = vector.broadcast %cst_47 : f32 to vector<8x128xf32>
    %62 = arith.maximumf %60, %61 : vector<8x128xf32>
    %63 = arith.truncf %62 : vector<8x128xf32> to vector<8x128xbf16>
    %c4 = arith.constant 4 : index
    %c0_48 = arith.constant 0 : index
    %c0_49 = arith.constant 0 : index
    %64 = vector.load %arg6[%c4, %c0_48, %c0_49] : memref<7x128x128xbf16, #tpu.memory_space<vmem>>, vector<1x128x128xbf16>
    %65 = vector.shape_cast %64 : vector<1x128x128xbf16> to vector<128x128xbf16>
    %cst_50 = arith.constant dense<0.000000e+00> : vector<8x128xf32>
    %66 = tpu.matmul %32, %65, %cst_50 {dimension_numbers = #tpu.dot_dimension_numbers<[1], [0], [0], [1], [0, 0, 1, 1], [], []>} : vector<8x128xbf16>, vector<128x128xbf16>, vector<8x128xf32> -> vector<8x128xf32>
    %c4_51 = arith.constant 4 : index
    %c0_52 = arith.constant 0 : index
    %c0_53 = arith.constant 0 : index
    %67 = vector.load %arg7[%c4_51, %c0_52, %c0_53] : memref<7x128x128xbf16, #tpu.memory_space<vmem>>, vector<1x128x128xbf16>
    %68 = vector.shape_cast %67 : vector<1x128x128xbf16> to vector<128x128xbf16>
    %cst_54 = arith.constant dense<0.000000e+00> : vector<8x128xf32>
    %69 = tpu.matmul %63, %68, %cst_54 {dimension_numbers = #tpu.dot_dimension_numbers<[1], [0], [0], [1], [0, 0, 1, 1], [], []>} : vector<8x128xbf16>, vector<128x128xbf16>, vector<8x128xf32> -> vector<8x128xf32>
    %70 = arith.addf %66, %69 : vector<8x128xf32>
    %c4_55 = arith.constant 4 : index
    %c0_56 = arith.constant 0 : index
    %71 = vector.load %arg8[%c4_55, %c0_56] : memref<7x128xf32, #tpu.memory_space<vmem>>, vector<1x128xf32>
    %72 = vector.broadcast %71 : vector<1x128xf32> to vector<8x128xf32>
    %73 = arith.addf %70, %72 : vector<8x128xf32>
    %cst_57 = arith.constant 0.000000e+00 : f32
    %74 = vector.broadcast %cst_57 : f32 to vector<8x128xf32>
    %75 = arith.maximumf %73, %74 : vector<8x128xf32>
    %76 = arith.truncf %75 : vector<8x128xf32> to vector<8x128xbf16>
    %c4_58 = arith.constant 4 : index
    %c0_59 = arith.constant 0 : index
    %77 = vector.load %arg5[%c4_58, %c0_59] : memref<8x128xf32, #tpu.memory_space<vmem>>, vector<1x128xf32>
    %c3_60 = arith.constant 3 : index
    %c0_61 = arith.constant 0 : index
    %c0_62 = arith.constant 0 : index
    %78 = vector.load %arg4[%c3_60, %c0_61, %c0_62] : memref<7x128x128xbf16, #tpu.memory_space<vmem>>, vector<1x128x128xbf16>
    %79 = vector.shape_cast %78 : vector<1x128x128xbf16> to vector<128x128xbf16>
    %cst_63 = arith.constant dense<0.000000e+00> : vector<8x128xf32>
    %80 = tpu.matmul %76, %79, %cst_63 {dimension_numbers = #tpu.dot_dimension_numbers<[1], [0], [0], [1], [0, 0, 1, 1], [], []>} : vector<8x128xbf16>, vector<128x128xbf16>, vector<8x128xf32> -> vector<8x128xf32>
    %81 = arith.truncf %80 : vector<8x128xf32> to vector<8x128xbf16>
    %cst_64 = arith.constant dense<0.000000e+00> : vector<8x128xf32>
    %82 = tpu.matmul %0, %81, %cst_64 {dimension_numbers = #tpu.dot_dimension_numbers<[1], [0], [0], [1], [0, 0, 1, 1], [], []>} : vector<8x8xbf16>, vector<8x128xbf16>, vector<8x128xf32> -> vector<8x128xf32>
    %83 = vector.broadcast %77 : vector<1x128xf32> to vector<8x128xf32>
    %84 = arith.addf %82, %83 : vector<8x128xf32>
    %85 = arith.truncf %84 : vector<8x128xf32> to vector<8x128xbf16>
    %c5 = arith.constant 5 : index
    %c0_65 = arith.constant 0 : index
    %86 = vector.load %arg5[%c5, %c0_65] : memref<8x128xf32, #tpu.memory_space<vmem>>, vector<1x128xf32>
    %c4_66 = arith.constant 4 : index
    %c0_67 = arith.constant 0 : index
    %c0_68 = arith.constant 0 : index
    %87 = vector.load %arg4[%c4_66, %c0_67, %c0_68] : memref<7x128x128xbf16, #tpu.memory_space<vmem>>, vector<1x128x128xbf16>
    %88 = vector.shape_cast %87 : vector<1x128x128xbf16> to vector<128x128xbf16>
    %cst_69 = arith.constant dense<0.000000e+00> : vector<8x128xf32>
    %89 = tpu.matmul %85, %88, %cst_69 {dimension_numbers = #tpu.dot_dimension_numbers<[1], [0], [0], [1], [0, 0, 1, 1], [], []>} : vector<8x128xbf16>, vector<128x128xbf16>, vector<8x128xf32> -> vector<8x128xf32>
    %90 = arith.truncf %89 : vector<8x128xf32> to vector<8x128xbf16>
    %cst_70 = arith.constant dense<0.000000e+00> : vector<8x128xf32>
    %91 = tpu.matmul %0, %90, %cst_70 {dimension_numbers = #tpu.dot_dimension_numbers<[1], [0], [0], [1], [0, 0, 1, 1], [], []>} : vector<8x8xbf16>, vector<8x128xbf16>, vector<8x128xf32> -> vector<8x128xf32>
    %92 = vector.broadcast %86 : vector<1x128xf32> to vector<8x128xf32>
    %93 = arith.addf %91, %92 : vector<8x128xf32>
    %94 = arith.truncf %93 : vector<8x128xf32> to vector<8x128xbf16>
    %c2_71 = arith.constant 2 : index
    %c0_72 = arith.constant 0 : index
    %c0_73 = arith.constant 0 : index
    %95 = vector.load %arg6[%c2_71, %c0_72, %c0_73] : memref<7x128x128xbf16, #tpu.memory_space<vmem>>, vector<1x128x128xbf16>
    %96 = vector.shape_cast %95 : vector<1x128x128xbf16> to vector<128x128xbf16>
    %cst_74 = arith.constant dense<0.000000e+00> : vector<8x128xf32>
    %97 = tpu.matmul %85, %96, %cst_74 {dimension_numbers = #tpu.dot_dimension_numbers<[1], [0], [0], [1], [0, 0, 1, 1], [], []>} : vector<8x128xbf16>, vector<128x128xbf16>, vector<8x128xf32> -> vector<8x128xf32>
    %c2_75 = arith.constant 2 : index
    %c0_76 = arith.constant 0 : index
    %c0_77 = arith.constant 0 : index
    %98 = vector.load %arg7[%c2_75, %c0_76, %c0_77] : memref<7x128x128xbf16, #tpu.memory_space<vmem>>, vector<1x128x128xbf16>
    %99 = vector.shape_cast %98 : vector<1x128x128xbf16> to vector<128x128xbf16>
    %cst_78 = arith.constant dense<0.000000e+00> : vector<8x128xf32>
    %100 = tpu.matmul %94, %99, %cst_78 {dimension_numbers = #tpu.dot_dimension_numbers<[1], [0], [0], [1], [0, 0, 1, 1], [], []>} : vector<8x128xbf16>, vector<128x128xbf16>, vector<8x128xf32> -> vector<8x128xf32>
    %101 = arith.addf %97, %100 : vector<8x128xf32>
    %c2_79 = arith.constant 2 : index
    %c0_80 = arith.constant 0 : index
    %102 = vector.load %arg8[%c2_79, %c0_80] : memref<7x128xf32, #tpu.memory_space<vmem>>, vector<1x128xf32>
    %103 = vector.broadcast %102 : vector<1x128xf32> to vector<8x128xf32>
    %104 = arith.addf %101, %103 : vector<8x128xf32>
    %cst_81 = arith.constant 0.000000e+00 : f32
    %105 = vector.broadcast %cst_81 : f32 to vector<8x128xf32>
    %106 = arith.maximumf %104, %105 : vector<8x128xf32>
    %107 = arith.truncf %106 : vector<8x128xf32> to vector<8x128xbf16>
    %c6 = arith.constant 6 : index
    %c0_82 = arith.constant 0 : index
    %108 = vector.load %arg5[%c6, %c0_82] : memref<8x128xf32, #tpu.memory_space<vmem>>, vector<1x128xf32>
    %c5_83 = arith.constant 5 : index
    %c0_84 = arith.constant 0 : index
    %c0_85 = arith.constant 0 : index
    %109 = vector.load %arg4[%c5_83, %c0_84, %c0_85] : memref<7x128x128xbf16, #tpu.memory_space<vmem>>, vector<1x128x128xbf16>
    %110 = vector.shape_cast %109 : vector<1x128x128xbf16> to vector<128x128xbf16>
    %cst_86 = arith.constant dense<0.000000e+00> : vector<8x128xf32>
    %111 = tpu.matmul %107, %110, %cst_86 {dimension_numbers = #tpu.dot_dimension_numbers<[1], [0], [0], [1], [0, 0, 1, 1], [], []>} : vector<8x128xbf16>, vector<128x128xbf16>, vector<8x128xf32> -> vector<8x128xf32>
    %112 = arith.truncf %111 : vector<8x128xf32> to vector<8x128xbf16>
    %cst_87 = arith.constant dense<0.000000e+00> : vector<8x128xf32>
    %113 = tpu.matmul %0, %112, %cst_87 {dimension_numbers = #tpu.dot_dimension_numbers<[1], [0], [0], [1], [0, 0, 1, 1], [], []>} : vector<8x8xbf16>, vector<8x128xbf16>, vector<8x128xf32> -> vector<8x128xf32>
    %114 = vector.broadcast %108 : vector<1x128xf32> to vector<8x128xf32>
    %115 = arith.addf %113, %114 : vector<8x128xf32>
    %116 = arith.truncf %115 : vector<8x128xf32> to vector<8x128xbf16>
    %c7 = arith.constant 7 : index
    %c0_88 = arith.constant 0 : index
    %117 = vector.load %arg5[%c7, %c0_88] : memref<8x128xf32, #tpu.memory_space<vmem>>, vector<1x128xf32>
    %c6_89 = arith.constant 6 : index
    %c0_90 = arith.constant 0 : index
    %c0_91 = arith.constant 0 : index
    %118 = vector.load %arg4[%c6_89, %c0_90, %c0_91] : memref<7x128x128xbf16, #tpu.memory_space<vmem>>, vector<1x128x128xbf16>
    %119 = vector.shape_cast %118 : vector<1x128x128xbf16> to vector<128x128xbf16>
    %cst_92 = arith.constant dense<0.000000e+00> : vector<8x128xf32>
    %120 = tpu.matmul %116, %119, %cst_92 {dimension_numbers = #tpu.dot_dimension_numbers<[1], [0], [0], [1], [0, 0, 1, 1], [], []>} : vector<8x128xbf16>, vector<128x128xbf16>, vector<8x128xf32> -> vector<8x128xf32>
    %121 = arith.truncf %120 : vector<8x128xf32> to vector<8x128xbf16>
    %cst_93 = arith.constant dense<0.000000e+00> : vector<8x128xf32>
    %122 = tpu.matmul %0, %121, %cst_93 {dimension_numbers = #tpu.dot_dimension_numbers<[1], [0], [0], [1], [0, 0, 1, 1], [], []>} : vector<8x8xbf16>, vector<8x128xbf16>, vector<8x128xf32> -> vector<8x128xf32>
    %123 = vector.broadcast %117 : vector<1x128xf32> to vector<8x128xf32>
    %124 = arith.addf %122, %123 : vector<8x128xf32>
    %125 = arith.truncf %124 : vector<8x128xf32> to vector<8x128xbf16>
    %c3_94 = arith.constant 3 : index
    %c0_95 = arith.constant 0 : index
    %c0_96 = arith.constant 0 : index
    %126 = vector.load %arg6[%c3_94, %c0_95, %c0_96] : memref<7x128x128xbf16, #tpu.memory_space<vmem>>, vector<1x128x128xbf16>
    %127 = vector.shape_cast %126 : vector<1x128x128xbf16> to vector<128x128xbf16>
    %cst_97 = arith.constant dense<0.000000e+00> : vector<8x128xf32>
    %128 = tpu.matmul %116, %127, %cst_97 {dimension_numbers = #tpu.dot_dimension_numbers<[1], [0], [0], [1], [0, 0, 1, 1], [], []>} : vector<8x128xbf16>, vector<128x128xbf16>, vector<8x128xf32> -> vector<8x128xf32>
    %c3_98 = arith.constant 3 : index
    %c0_99 = arith.constant 0 : index
    %c0_100 = arith.constant 0 : index
    %129 = vector.load %arg7[%c3_98, %c0_99, %c0_100] : memref<7x128x128xbf16, #tpu.memory_space<vmem>>, vector<1x128x128xbf16>
    %130 = vector.shape_cast %129 : vector<1x128x128xbf16> to vector<128x128xbf16>
    %cst_101 = arith.constant dense<0.000000e+00> : vector<8x128xf32>
    %131 = tpu.matmul %125, %130, %cst_101 {dimension_numbers = #tpu.dot_dimension_numbers<[1], [0], [0], [1], [0, 0, 1, 1], [], []>} : vector<8x128xbf16>, vector<128x128xbf16>, vector<8x128xf32> -> vector<8x128xf32>
    %132 = arith.addf %128, %131 : vector<8x128xf32>
    %c3_102 = arith.constant 3 : index
    %c0_103 = arith.constant 0 : index
    %133 = vector.load %arg8[%c3_102, %c0_103] : memref<7x128xf32, #tpu.memory_space<vmem>>, vector<1x128xf32>
    %134 = vector.broadcast %133 : vector<1x128xf32> to vector<8x128xf32>
    %135 = arith.addf %132, %134 : vector<8x128xf32>
    %cst_104 = arith.constant 0.000000e+00 : f32
    %136 = vector.broadcast %cst_104 : f32 to vector<8x128xf32>
    %137 = arith.maximumf %135, %136 : vector<8x128xf32>
    %138 = arith.truncf %137 : vector<8x128xf32> to vector<8x128xbf16>
    %c5_105 = arith.constant 5 : index
    %c0_106 = arith.constant 0 : index
    %c0_107 = arith.constant 0 : index
    %139 = vector.load %arg6[%c5_105, %c0_106, %c0_107] : memref<7x128x128xbf16, #tpu.memory_space<vmem>>, vector<1x128x128xbf16>
    %140 = vector.shape_cast %139 : vector<1x128x128xbf16> to vector<128x128xbf16>
    %cst_108 = arith.constant dense<0.000000e+00> : vector<8x128xf32>
    %141 = tpu.matmul %107, %140, %cst_108 {dimension_numbers = #tpu.dot_dimension_numbers<[1], [0], [0], [1], [0, 0, 1, 1], [], []>} : vector<8x128xbf16>, vector<128x128xbf16>, vector<8x128xf32> -> vector<8x128xf32>
    %c5_109 = arith.constant 5 : index
    %c0_110 = arith.constant 0 : index
    %c0_111 = arith.constant 0 : index
    %142 = vector.load %arg7[%c5_109, %c0_110, %c0_111] : memref<7x128x128xbf16, #tpu.memory_space<vmem>>, vector<1x128x128xbf16>
    %143 = vector.shape_cast %142 : vector<1x128x128xbf16> to vector<128x128xbf16>
    %cst_112 = arith.constant dense<0.000000e+00> : vector<8x128xf32>
    %144 = tpu.matmul %138, %143, %cst_112 {dimension_numbers = #tpu.dot_dimension_numbers<[1], [0], [0], [1], [0, 0, 1, 1], [], []>} : vector<8x128xbf16>, vector<128x128xbf16>, vector<8x128xf32> -> vector<8x128xf32>
    %145 = arith.addf %141, %144 : vector<8x128xf32>
    %c5_113 = arith.constant 5 : index
    %c0_114 = arith.constant 0 : index
    %146 = vector.load %arg8[%c5_113, %c0_114] : memref<7x128xf32, #tpu.memory_space<vmem>>, vector<1x128xf32>
    %147 = vector.broadcast %146 : vector<1x128xf32> to vector<8x128xf32>
    %148 = arith.addf %145, %147 : vector<8x128xf32>
    %cst_115 = arith.constant 0.000000e+00 : f32
    %149 = vector.broadcast %cst_115 : f32 to vector<8x128xf32>
    %150 = arith.maximumf %148, %149 : vector<8x128xf32>
    %151 = arith.truncf %150 : vector<8x128xf32> to vector<8x128xbf16>
    %c6_116 = arith.constant 6 : index
    %c0_117 = arith.constant 0 : index
    %c0_118 = arith.constant 0 : index
    %152 = vector.load %arg6[%c6_116, %c0_117, %c0_118] : memref<7x128x128xbf16, #tpu.memory_space<vmem>>, vector<1x128x128xbf16>
    %153 = vector.shape_cast %152 : vector<1x128x128xbf16> to vector<128x128xbf16>
    %cst_119 = arith.constant dense<0.000000e+00> : vector<8x128xf32>
    %154 = tpu.matmul %76, %153, %cst_119 {dimension_numbers = #tpu.dot_dimension_numbers<[1], [0], [0], [1], [0, 0, 1, 1], [], []>} : vector<8x128xbf16>, vector<128x128xbf16>, vector<8x128xf32> -> vector<8x128xf32>
    %c6_120 = arith.constant 6 : index
    %c0_121 = arith.constant 0 : index
    %c0_122 = arith.constant 0 : index
    %155 = vector.load %arg7[%c6_120, %c0_121, %c0_122] : memref<7x128x128xbf16, #tpu.memory_space<vmem>>, vector<1x128x128xbf16>
    %156 = vector.shape_cast %155 : vector<1x128x128xbf16> to vector<128x128xbf16>
    %cst_123 = arith.constant dense<0.000000e+00> : vector<8x128xf32>
    %157 = tpu.matmul %151, %156, %cst_123 {dimension_numbers = #tpu.dot_dimension_numbers<[1], [0], [0], [1], [0, 0, 1, 1], [], []>} : vector<8x128xbf16>, vector<128x128xbf16>, vector<8x128xf32> -> vector<8x128xf32>
    %158 = arith.addf %154, %157 : vector<8x128xf32>
    %c6_124 = arith.constant 6 : index
    %c0_125 = arith.constant 0 : index
    %159 = vector.load %arg8[%c6_124, %c0_125] : memref<7x128xf32, #tpu.memory_space<vmem>>, vector<1x128xf32>
    %160 = vector.broadcast %159 : vector<1x128xf32> to vector<8x128xf32>
    %161 = arith.addf %158, %160 : vector<8x128xf32>
    %cst_126 = arith.constant 0.000000e+00 : f32
    %162 = vector.broadcast %cst_126 : f32 to vector<8x128xf32>
    %163 = arith.maximumf %161, %162 : vector<8x128xf32>
    %c0_127 = arith.constant 0 : index
    %c0_128 = arith.constant 0 : index
    %164 = vector.load %arg9[%c0_127, %c0_128] : memref<8x128xf32, #tpu.memory_space<vmem>>, vector<8x128xf32>
    tpu.vector_store %arg9[%c0_127, %c0_128], %163 {strides = array<i32>} : memref<8x128xf32, #tpu.memory_space<vmem>>, vector<8x128xf32>,
    return
  }
  func.func @transform_0(%arg0: i32) -> (i32, i32) {
    %c0_i32 = arith.constant 0 : i32
    %c0_i32_0 = arith.constant 0 : i32
    %c0_i32_1 = arith.constant 0 : i32
    return %c0_i32, %c0_i32_0 : i32, i32
  }
  func.func @transform_1(%arg0: i32) -> (i32, i32) {
    %c0_i32 = arith.constant 0 : i32
    %c0_i32_0 = arith.constant 0 : i32
    %c0_i32_1 = arith.constant 0 : i32
    return %c0_i32, %c0_i32_0 : i32, i32
  }
  func.func @transform_2(%arg0: i32) -> (i32, i32) {
    %c0_i32 = arith.constant 0 : i32
    %c0_i32_0 = arith.constant 0 : i32
    %c0_i32_1 = arith.constant 0 : i32
    return %c0_i32, %c0_i32_0 : i32, i32
  }
  func.func @transform_3(%arg0: i32) -> (i32, i32, i32) {
    %c0_i32 = arith.constant 0 : i32
    %c0_i32_0 = arith.constant 0 : i32
    %c0_i32_1 = arith.constant 0 : i32
    %c0_i32_2 = arith.constant 0 : i32
    return %c0_i32, %c0_i32_0, %c0_i32_1 : i32, i32, i32
  }
  func.func @transform_4(%arg0: i32) -> (i32, i32) {
    %c0_i32 = arith.constant 0 : i32
    %c0_i32_0 = arith.constant 0 : i32
    %c0_i32_1 = arith.constant 0 : i32
    return %c0_i32, %c0_i32_0 : i32, i32
  }
  func.func @transform_5(%arg0: i32) -> (i32, i32, i32) {
    %c0_i32 = arith.constant 0 : i32
    %c0_i32_0 = arith.constant 0 : i32
    %c0_i32_1 = arith.constant 0 : i32
    %c0_i32_2 = arith.constant 0 : i32
    return %c0_i32, %c0_i32_0, %c0_i32_1 : i32, i32, i32
  }
  func.func @transform_6(%arg0: i32) -> (i32, i32, i32) {
    %c0_i32 = arith.constant 0 : i32
    %c0_i32_0 = arith.constant 0 : i32
    %c0_i32_1 = arith.constant 0 : i32
    %c0_i32_2 = arith.constant 0 : i32
    return %c0_i32, %c0_i32_0, %c0_i32_1 : i32, i32, i32
  }
  func.func @transform_7(%arg0: i32) -> (i32, i32) {
    %c0_i32 = arith.constant 0 : i32
    %c0_i32_0 = arith.constant 0 : i32
    %c0_i32_1 = arith.constant 0 : i32
    return %c0_i32, %c0_i32_0 : i32, i32
  }
  func.func @transform_8(%arg0: i32) -> (i32, i32) {
    %c0_i32 = arith.constant 0 : i32
    %c0_i32_0 = arith.constant 0 : i32
    %c0_i32_1 = arith.constant 0 : i32
    return %c0_i32, %c0_i32_0 : i32, i32
  }
}

</mosaic_0001>

<bundles_post_ra>
// kernel: blockhla8_forward.1
= control target key start
LH: loop header
LB: loop body
LE: loop exit
PB: predicated region body
PF: predicated region fallthrough
CT: control target
= control target key end

     0   :  { %vm39_vm0 = vcmask 1043456   ;;  %v4206_v1 = vmov 0.0   ;;  %vm4207_vm1 = vmmov 0   ;;  %vm35_vm2 = vcmask 64512   ;;  %s5132_s0 = inlined_call_operand.vmem [shape: bf16[8,8], index: 0, kind: input, shape index: {}]   ;;  %s5133_s1 = inlined_call_operand.vmem [shape: f32[8,128], index: 1, kind: input, shape index: {}]   ;;  %s5134_s2 = inlined_call_operand.vmem [shape: bf16[128,128], index: 2, kind: input, shape index: {}]   ;;  %s5135_s3 = inlined_call_operand.vmem [shape: bf16[7,128,128], index: 3, kind: input, shape index: {}]   ;;  %s5136_s4 = inlined_call_operand.vmem [shape: f32[8,128], index: 4, kind: input, shape index: {}]   ;;  %s5137_s5 = inlined_call_operand.vmem [shape: bf16[7,128,128], index: 5, kind: input, shape index: {}]   ;;  %s5138_s6 = inlined_call_operand.vmem [shape: bf16[7,128,128], index: 6, kind: input, shape index: {}]   ;;  %s5139_s7 = inlined_call_operand.vmem [shape: f32[7,128], index: 7, kind: input, shape index: {}]   ;;  %s5140_s8 = inlined_call_operand.hbm [shape: f32[8,128], index: 8, kind: output, shape index: {}]  }
   0x1   :  { %v32_v0 = vld [vmem:[%s5133_s1] sm:$0xff]  ;;  %3516 = vmatprep.subr.bf16.mxu0 %v4206_v1  ;;  %3518 = vmatprep.mubr.msk.bf16.mxu0 %vm4207_vm1, %v4206_v1  ;;  %v4007_v3 = vld [vmem:[%s5134_s2 + $0x38] sm:$0xff]   ;;  %v4008_v6 = vld [vmem:[%s5134_s2 + $0x30] sm:$0xff]  }
   0x2   :  { %v33_v2 = vpack.c.bf16 %v32_v0, %v32_v0  ;;  %v4266_v4 = vld [vmem:[%s5132_s0] sm:$0xf]  ;;  %3522 = vmatprep.subr.bf16.mxu1 %v4206_v1  ;;  %3538 = vmatprep.mubr.msk.bf16.mxu1 %vm4207_vm1, %v4206_v1  ;;  %v4009_v7 = vld [vmem:[%s5134_s2 + $0x28] sm:$0xff]   ;;  %v4011_v9 = vld [vmem:[%s5134_s2 + $0x18] sm:$0xff]  }
   0x3   :  { %3523 = vmatpush3.bf16.msra.mxu1 %v4007_v3  ;;  %v4010_v8 = vld [vmem:[%s5134_s2 + $0x20] sm:$0xff]   ;;  %v4012_v10 = vld [vmem:[%s5134_s2 + $0x10] sm:$0xff]   ;;  %v4013_v11 = vld [vmem:[%s5134_s2 + $0x8] sm:$0xff]  }
   0x4   :  { %v41_v5 = vsel %vm39_vm0, %v33_v2, 0  ;;  %3524 = vmatprep.subr.bf16.mxu1 %v4206_v1  ;;  %v4014_v12 = vld [vmem:[%s5134_s2] sm:$0xff]   ;;  %v4015_v13 = vld [vmem:[%s5135_s3 + $0x38] sm:$0xff]   ;;  %v4016_v14 = vld [vmem:[%s5135_s3 + $0x30] sm:$0xff]  }
   0x5   :  { %3517 = vmatpush3.bf16.msra.mxu0 %v41_v5  ;;  %v4017_v15 = vld [vmem:[%s5135_s3 + $0x28] sm:$0xff]   ;;  %v4018_v16 = vld [vmem:[%s5135_s3 + $0x20] sm:$0xff]   ;;  %v4019_v17 = vld [vmem:[%s5135_s3 + $0x18] sm:$0xff]  }
   0x6   :  { %3542 = vmatprep.subr.bf16.mxu0 %v4206_v1  ;;  %v4020_v18 = vld [vmem:[%s5135_s3 + $0x10] sm:$0xff]   ;;  %v4021_v19 = vld [vmem:[%s5135_s3 + $0x8] sm:$0xff]  }
   0x7   :  { %3525 = vmatpush3.bf16.msra.mxu1 %v4008_v6 }
   0x8   :  { %3519 = vmatmul.mubr.msk.bf16.vlgmr.msra.gmra.mxu0 %vm35_vm2, %v4266_v4  ;;  %3526 = vmatprep.subr.bf16.mxu1 %v4206_v1 }
   0x9   :  { %3558 = vmatprep.mubr.msk.bf16.mxu0 %vm4207_vm1, %v4206_v1  ;;  %3543 = vmatpush3.bf16.msra.mxu0 %v4015_v13 }
   0xa   :  { %3544 = vmatprep.subr.bf16.mxu0 %v4206_v1 }
   0xb   :  { %3527 = vmatpush3.bf16.msra.mxu1 %v4009_v7 }
   0xc   :  { %3528 = vmatprep.subr.bf16.mxu1 %v4206_v1 }
   0xd   :  { %3545 = vmatpush3.bf16.msra.mxu0 %v4016_v14 }
   0xe   :  { %3546 = vmatprep.subr.bf16.mxu0 %v4206_v1 }
   0xf   :  { %3529 = vmatpush3.bf16.msra.mxu1 %v4010_v8 }
  0x10   :  { %3530 = vmatprep.subr.bf16.mxu1 %v4206_v1 }
  0x11   :  { %3547 = vmatpush3.bf16.msra.mxu0 %v4017_v15 }
  0x12   :  { %3548 = vmatprep.subr.bf16.mxu0 %v4206_v1 }
  0x13   :  { %3531 = vmatpush3.bf16.msra.mxu1 %v4011_v9 }
  0x14   :  { %3532 = vmatprep.subr.bf16.mxu1 %v4206_v1 }
  0x15   :  { %3549 = vmatpush3.bf16.msra.mxu0 %v4018_v16 }
  0x16   :  { %3550 = vmatprep.subr.bf16.mxu0 %v4206_v1 }
  0x17   :  { %3533 = vmatpush3.bf16.msra.mxu1 %v4012_v10 }
  0x18   :  { %3534 = vmatprep.subr.bf16.mxu1 %v4206_v1 }
  0x19   :  { %3551 = vmatpush3.bf16.msra.mxu0 %v4019_v17 }
  0x1a   :  { %3552 = vmatprep.subr.bf16.mxu0 %v4206_v1 }
  0x1b   :  { %3535 = vmatpush3.bf16.msra.mxu1 %v4013_v11 }
  0x1c   :  { %3536 = vmatprep.subr.bf16.mxu1 %v4206_v1 }
  0x1d   :  { %3553 = vmatpush3.bf16.msra.mxu0 %v4020_v18 }
  0x1e   :  { %3554 = vmatprep.subr.bf16.mxu0 %v4206_v1 }
  0x1f   :  { %3537 = vmatpush3.bf16.msra.mxu1 %v4014_v12 }
  0x20   :  { %3562 = vmatprep.subr.bf16.mxu1 %v4206_v1 }
  0x21   :  { %3555 = vmatpush3.bf16.msra.mxu0 %v4021_v19 }
  0x22   :  { %3556 = vmatprep.subr.bf16.mxu0 %v4206_v1 }
  0x23   :  { %13 = vsyncpa [#allocation3], 0  ;;  %v4022_v25 = vld [vmem:[%s5135_s3] sm:$0xff]   ;;  %v4031_v33 = vld [vmem:[%s5138_s6 + $0x38] sm:$0xff]  }
  0x24   :  { %v2816_v26 = vld [vmem:[%s5136_s4] ss:$0 sm:$0xff]  ;;  %v4032_v34 = vld [vmem:[%s5138_s6 + $0x30] sm:$0xff]   ;;  %v4033_v35 = vld [vmem:[%s5138_s6 + $0x28] sm:$0xff]  }
  0x25   :  { %3557 = vmatpush3.bf16.msra.mxu0 %v4022_v25  ;;  %v4034_v36 = vld [vmem:[%s5138_s6 + $0x20] sm:$0xff]   ;;  %v4035_v37 = vld [vmem:[%s5138_s6 + $0x18] sm:$0xff]   ;;  %v4036_v38 = vld [vmem:[%s5138_s6 + $0x10] sm:$0xff]  }
  0x26   :  { %3568 = vmatprep.subr.bf16.mxu0 %v4206_v1  ;;  %v4037_v39 = vld [vmem:[%s5138_s6 + $0x8] sm:$0xff]   ;;  %v4023_v45 = vld [vmem:[%s5137_s5 + $0x38] sm:$0xff]   ;;  %v4024_v47 = vld [vmem:[%s5137_s5 + $0x30] sm:$0xff]  }
  0x27   :  { %v4025_v48 = vld [vmem:[%s5137_s5 + $0x28] sm:$0xff]   ;;  %v4026_v49 = vld [vmem:[%s5137_s5 + $0x20] sm:$0xff]   ;;  %v4027_v50 = vld [vmem:[%s5137_s5 + $0x18] sm:$0xff]  }
  0x28   :  { %v4028_v51 = vld [vmem:[%s5137_s5 + $0x10] sm:$0xff]   ;;  %v4029_v52 = vld [vmem:[%s5137_s5 + $0x8] sm:$0xff]   ;;  %v4030_v53 = vld [vmem:[%s5137_s5] sm:$0xff]  }
  0x29   :  { %v4038_v54 = vld [vmem:[%s5138_s6] sm:$0xff]   ;;  %v4039_v59 = vld [vmem:[%s5135_s3 + $0x78] sm:$0xff]   ;;  %v4040_v63 = vld [vmem:[%s5135_s3 + $0x70] sm:$0xff]  }
  0x2a   :  { %v2833_v55 = vld [vmem:[%s5136_s4 + $0x1] ss:$0 sm:$0xff]  ;;  %v4041_v0 = vld [vmem:[%s5135_s3 + $0x68] sm:$0xff]   ;;  %v4043_v3 = vld [vmem:[%s5135_s3 + $0x58] sm:$0xff]  }
  0x2b   :  { %v4042_v2 = vld [vmem:[%s5135_s3 + $0x60] sm:$0xff]   ;;  %v4045_v9 = vld [vmem:[%s5135_s3 + $0x48] sm:$0xff]   ;;  %v4047_v25 = vld [vmem:[%s5135_s3 + $0xb8] sm:$0xff]  }
  0x2c   :  { %v4046_v10 = vld [vmem:[%s5135_s3 + $0x40] sm:$0xff]  }
  0x2d   :  { %v2851_v12 = vld [vmem:[%s5139_s7] ss:$0 sm:$0xff] }
  0xc8   :  { %v77_v20 = vpop.f32.mrf.mxu0 }
  0xc9   :  { %v83_v21 = vpack.c.bf16 %v77_v20, %v77_v20 }
  0xca   :  { %v3520_v22 = vpop.f32.mrf.mxu0 }
  0xcb   :  { %3539 = vmatmul.mubr.bf16.vlgmr.msra.gmra.mxu1 %v83_v21 }
  0xcc   :  { %v80_v23 = vpop.f32.mrf.mxu0  ;;  %3564 = vmatprep.mubr.msk.bf16.mxu1 %vm4207_vm1, %v4206_v1 }
  0xce   :  { %v3521_v24 = vpop.f32.mrf.mxu0 }
 0x18b   :  { %v186_v27 = vpop.f32.mrf.mxu1 }
 0x18c   :  { %v187_v28 = vadd.f32 %v2816_v26, %v186_v27  ;;  %v4470_v27 = vld [vmem:[%s5132_s0] sm:$0xf] }
 0x18d   :  { %v3540_v29 = vpop.f32.mrf.mxu1 }
 0x18e   :  { %v192_v30 = vpack.c.bf16 %v187_v28, %v187_v28  ;;  %v4048_v28 = vld [vmem:[%s5135_s3 + $0xb0] sm:$0xff]   ;;  %v4049_v29 = vld [vmem:[%s5135_s3 + $0xa8] sm:$0xff]  }
 0x18f   :  { %v189_v31 = vpop.f32.mrf.mxu1 }
 0x190   :  { %3559 = vmatmul.mubr.bf16.vlgmr.msra.gmra.mxu0 %v192_v30  ;;  %v4051_v31 = vld [vmem:[%s5135_s3 + $0x98] sm:$0xff]  }
 0x191   :  { %v3541_v32 = vpop.f32.mrf.mxu1  ;;  %3584 = vmatprep.mubr.msk.bf16.mxu0 %vm4207_vm1, %v4206_v1  ;;  %3569 = vmatpush3.bf16.msra.mxu0 %v4031_v33  ;;  %v4053_v33 = vld [vmem:[%s5135_s3 + $0x88] sm:$0xff]  }
 0x192   :  { %3570 = vmatprep.subr.bf16.mxu0 %v4206_v1  ;;  %v4052_v32 = vld [vmem:[%s5135_s3 + $0x90] sm:$0xff]  }
 0x195   :  { %3571 = vmatpush3.bf16.msra.mxu0 %v4032_v34  ;;  %v4054_v34 = vld [vmem:[%s5135_s3 + $0x80] sm:$0xff]  }
 0x196   :  { %3572 = vmatprep.subr.bf16.mxu0 %v4206_v1 }
 0x199   :  { %3573 = vmatpush3.bf16.msra.mxu0 %v4033_v35  ;;  %v2876_v35 = vld [vmem:[%s5136_s4 + $0x2] ss:$0 sm:$0xff] }
 0x19a   :  { %3574 = vmatprep.subr.bf16.mxu0 %v4206_v1 }
 0x19d   :  { %3575 = vmatpush3.bf16.msra.mxu0 %v4034_v36 }
 0x19e   :  { %3576 = vmatprep.subr.bf16.mxu0 %v4206_v1 }
 0x1a1   :  { %3577 = vmatpush3.bf16.msra.mxu0 %v4035_v37 }
 0x1a2   :  { %3578 = vmatprep.subr.bf16.mxu0 %v4206_v1 }
 0x1a5   :  { %3579 = vmatpush3.bf16.msra.mxu0 %v4036_v38 }
 0x1a6   :  { %3580 = vmatprep.subr.bf16.mxu0 %v4206_v1 }
 0x1a9   :  { %3581 = vmatpush3.bf16.msra.mxu0 %v4037_v39  ;;  %v4055_v39 = vld [vmem:[%s5137_s5 + $0x78] sm:$0xff]  }
 0x1aa   :  { %3582 = vmatprep.subr.bf16.mxu0 %v4206_v1 }
 0x1ad   :  { %3583 = vmatpush3.bf16.msra.mxu0 %v4038_v54  ;;  %v4067_v54 = vld [vmem:[%s5137_s5 + $0x118] sm:$0xff]  }
 0x1ae   :  { %3608 = vmatprep.subr.bf16.mxu0 %v4206_v1 }
 0x250   :  { %v292_v40 = vpop.f32.mrf.mxu0 }
 0x251   :  { %v298_v41 = vpack.c.bf16 %v292_v40, %v292_v40 }
 0x252   :  { %v3560_v42 = vpop.f32.mrf.mxu0 }
 0x253   :  { %v304_v43 = vsel %vm39_vm0, %v298_v41, 0 }
 0x254   :  { %v295_v44 = vpop.f32.mrf.mxu0  ;;  %3563 = vmatpush3.bf16.msra.mxu1 %v304_v43  ;;  %v4056_v43 = vld [vmem:[%s5137_s5 + $0x70] sm:$0xff]  }
 0x255   :  { %3588 = vmatprep.subr.bf16.mxu1 %v4206_v1  ;;  %v4057_v44 = vld [vmem:[%s5137_s5 + $0x68] sm:$0xff]  }
 0x256   :  { %v3561_v46 = vpop.f32.mrf.mxu0 }
 0x257   :  { %3565 = vmatmul.mubr.msk.bf16.vlgmr.msra.gmra.mxu1 %vm35_vm2, %v4266_v4  ;;  %v4044_v4 = vld [vmem:[%s5135_s3 + $0x50] sm:$0xff]   ;;  %v4059_v46 = vld [vmem:[%s5137_s5 + $0x58] sm:$0xff]  }
 0x258   :  { %3589 = vmatpush3.bf16.msra.mxu1 %v4023_v45  ;;  %3604 = vmatprep.mubr.msk.bf16.mxu1 %vm4207_vm1, %v4206_v1  ;;  %v4058_v45 = vld [vmem:[%s5137_s5 + $0x60] sm:$0xff]  }
 0x259   :  { %3590 = vmatprep.subr.bf16.mxu1 %v4206_v1 }
 0x25c   :  { %3591 = vmatpush3.bf16.msra.mxu1 %v4024_v47  ;;  %v4060_v47 = vld [vmem:[%s5137_s5 + $0x50] sm:$0xff]  }
 0x25d   :  { %3592 = vmatprep.subr.bf16.mxu1 %v4206_v1 }
 0x260   :  { %3593 = vmatpush3.bf16.msra.mxu1 %v4025_v48  ;;  %v4061_v48 = vld [vmem:[%s5137_s5 + $0x48] sm:$0xff]  }
 0x261   :  { %3594 = vmatprep.subr.bf16.mxu1 %v4206_v1 }
 0x264   :  { %3595 = vmatpush3.bf16.msra.mxu1 %v4026_v49  ;;  %v4062_v49 = vld [vmem:[%s5137_s5 + $0x40] sm:$0xff]  }
 0x265   :  { %3596 = vmatprep.subr.bf16.mxu1 %v4206_v1 }
 0x268   :  { %3597 = vmatpush3.bf16.msra.mxu1 %v4027_v50  ;;  %v4063_v50 = vld [vmem:[%s5137_s5 + $0x138] sm:$0xff]  }
 0x269   :  { %3598 = vmatprep.subr.bf16.mxu1 %v4206_v1 }
 0x26c   :  { %3599 = vmatpush3.bf16.msra.mxu1 %v4028_v51  ;;  %v4064_v51 = vld [vmem:[%s5137_s5 + $0x130] sm:$0xff]  }
 0x26d   :  { %3600 = vmatprep.subr.bf16.mxu1 %v4206_v1 }
 0x270   :  { %3601 = vmatpush3.bf16.msra.mxu1 %v4029_v52  ;;  %v4065_v52 = vld [vmem:[%s5137_s5 + $0x128] sm:$0xff]  }
 0x271   :  { %3602 = vmatprep.subr.bf16.mxu1 %v4206_v1 }
 0x274   :  { %3603 = vmatpush3.bf16.msra.mxu1 %v4030_v53  ;;  %v4066_v53 = vld [vmem:[%s5137_s5 + $0x120] sm:$0xff]  }
 0x275   :  { %3628 = vmatprep.subr.bf16.mxu1 %v4206_v1 }
 0x277   :  { %3605 = vmatmul.mubr.bf16.vlgmr.msra.gmra.mxu1 %v192_v30  ;;  %v4050_v30 = vld [vmem:[%s5135_s3 + $0xa0] sm:$0xff]  }
 0x278   :  { %3630 = vmatprep.mubr.msk.bf16.mxu1 %vm4207_vm1, %v4206_v1 }
 0x317   :  { %v340_v56 = vpop.f32.mrf.mxu1 }
 0x318   :  { %v341_v57 = vadd.f32 %v2833_v55, %v340_v56  ;;  %v4068_v55 = vld [vmem:[%s5137_s5 + $0x110] sm:$0xff]   ;;  %v4069_v56 = vld [vmem:[%s5137_s5 + $0x108] sm:$0xff]  }
 0x319   :  { %v3566_v58 = vpop.f32.mrf.mxu1 }
 0x31a   :  { %v346_v60 = vpack.c.bf16 %v341_v57, %v341_v57  ;;  %v4070_v57 = vld [vmem:[%s5137_s5 + $0x100] sm:$0xff]  }
 0x31b   :  { %v343_v61 = vpop.f32.mrf.mxu1 }
 0x31c   :  { %3585 = vmatmul.mubr.bf16.vlgmr.msra.gmra.mxu0 %v346_v60 }
 0x31d   :  { %v3567_v62 = vpop.f32.mrf.mxu1  ;;  %3609 = vmatpush3.bf16.msra.mxu0 %v4039_v59  ;;  %3624 = vmatprep.mubr.msk.bf16.mxu0 %vm4207_vm1, %v4206_v1 }
 0x31e   :  { %3610 = vmatprep.subr.bf16.mxu0 %v4206_v1 }
 0x321   :  { %3611 = vmatpush3.bf16.msra.mxu0 %v4040_v63  ;;  %v4071_v63 = vld [vmem:[%s5138_s6 + $0x78] sm:$0xff]  }
 0x322   :  { %3612 = vmatprep.subr.bf16.mxu0 %v4206_v1 }
 0x325   :  { %3613 = vmatpush3.bf16.msra.mxu0 %v4041_v0 }
 0x326   :  { %3614 = vmatprep.subr.bf16.mxu0 %v4206_v1 }
 0x329   :  { %3615 = vmatpush3.bf16.msra.mxu0 %v4042_v2  ;;  %v4072_v2 = vld [vmem:[%s5138_s6 + $0x70] sm:$0xff]  }
 0x32a   :  { %3616 = vmatprep.subr.bf16.mxu0 %v4206_v1 }
 0x32d   :  { %3617 = vmatpush3.bf16.msra.mxu0 %v4043_v3  ;;  %v4073_v3 = vld [vmem:[%s5138_s6 + $0x68] sm:$0xff]  }
 0x32e   :  { %3618 = vmatprep.subr.bf16.mxu0 %v4206_v1 }
 0x331   :  { %3619 = vmatpush3.bf16.msra.mxu0 %v4044_v4  ;;  %v4074_v4 = vld [vmem:[%s5138_s6 + $0x60] sm:$0xff]  }
 0x332   :  { %3620 = vmatprep.subr.bf16.mxu0 %v4206_v1 }
 0x335   :  { %3621 = vmatpush3.bf16.msra.mxu0 %v4045_v9 }
 0x336   :  { %3622 = vmatprep.subr.bf16.mxu0 %v4206_v1 }
 0x337   :  { %v549_v5 = vpop.f32.mrf.mxu1 }
 0x339   :  { %v3606_v6 = vpop.f32.mrf.mxu1  ;;  %3623 = vmatpush3.bf16.msra.mxu0 %v4046_v10 }
 0x33a   :  { %3654 = vmatprep.subr.bf16.mxu0 %v4206_v1  ;;  %v4076_v6 = vld [vmem:[%s5138_s6 + $0x50] sm:$0xff]  }
 0x33b   :  { %v552_v7 = vpop.f32.mrf.mxu1 }
 0x33c   :  { %v4077_v7 = vld [vmem:[%s5138_s6 + $0x48] sm:$0xff]  }
 0x33d   :  { %v3607_v8 = vpop.f32.mrf.mxu1 }
 0x3dc   :  { %v461_v11 = vpop.f32.mrf.mxu0 }
 0x3dd   :  { %v550_v13 = vadd.f32 %v549_v5, %v461_v11  ;;  %v4075_v5 = vld [vmem:[%s5138_s6 + $0x58] sm:$0xff]  }
 0x3de   :  { %v3586_v14 = vpop.f32.mrf.mxu0 }
 0x3df   :  { %v560_v15 = vadd.f32 %v2851_v12, %v550_v13 }
 0x3e0   :  { %v464_v16 = vpop.f32.mrf.mxu0 }
 0x3e1   :  { %v561_v17 = vmax.f32 %v560_v15, 0.0  ;;  %v4078_v16 = vld [vmem:[%s5138_s6 + $0x40] sm:$0xff]  }
 0x3e2   :  { %v3587_v18 = vpop.f32.mrf.mxu0 }
 0x3e3   :  { %v4457_v19 = vpack.c.bf16 %v561_v17, %v561_v17  ;;  %v2902_v17 = vld [vmem:[%s5136_s4 + $0x3] ss:$0 sm:$0xff] }
 0x3e5   :  { %3625 = vmatmul.mubr.bf16.vlgmr.msra.gmra.mxu0 %v4457_v19 }
 0x3e6   :  { %3656 = vmatprep.mubr.msk.bf16.mxu0 %vm4207_vm1, %v4206_v1 }
 0x4a5   :  { %v663_v20 = vpop.f32.mrf.mxu0 }
 0x4a6   :  { %v669_v21 = vpack.c.bf16 %v663_v20, %v663_v20 }
 0x4a7   :  { %v3626_v22 = vpop.f32.mrf.mxu0 }
 0x4a8   :  { %v675_v23 = vsel %vm39_vm0, %v669_v21, 0  ;;  %v4079_v21 = vld [vmem:[%s5138_s6 + $0x138] sm:$0xff]  }
 0x4a9   :  { %v666_v24 = vpop.f32.mrf.mxu0  ;;  %3629 = vmatpush3.bf16.msra.mxu1 %v675_v23 }
 0x4aa   :  { %3634 = vmatprep.subr.bf16.mxu1 %v4206_v1 }
 0x4ab   :  { %v3627_v26 = vpop.f32.mrf.mxu0 }
 0x4ac   :  { %3631 = vmatmul.mubr.msk.bf16.vlgmr.msra.gmra.mxu1 %vm35_vm2, %v4470_v27  ;;  %v4081_v26 = vld [vmem:[%s5138_s6 + $0x128] sm:$0xff]  }
 0x4ad   :  { %3635 = vmatpush3.bf16.msra.mxu1 %v4047_v25  ;;  %3650 = vmatprep.mubr.msk.bf16.mxu1 %vm4207_vm1, %v4206_v1  ;;  %v4080_v25 = vld [vmem:[%s5138_s6 + $0x130] sm:$0xff]  }
 0x4ae   :  { %3636 = vmatprep.subr.bf16.mxu1 %v4206_v1 }
 0x4b1   :  { %3637 = vmatpush3.bf16.msra.mxu1 %v4048_v28  ;;  %v4082_v28 = vld [vmem:[%s5138_s6 + $0x120] sm:$0xff]  }
 0x4b2   :  { %3638 = vmatprep.subr.bf16.mxu1 %v4206_v1 }
 0x4b5   :  { %3639 = vmatpush3.bf16.msra.mxu1 %v4049_v29  ;;  %v4083_v29 = vld [vmem:[%s5138_s6 + $0x118] sm:$0xff]  }
 0x4b6   :  { %3640 = vmatprep.subr.bf16.mxu1 %v4206_v1 }
 0x4b9   :  { %3641 = vmatpush3.bf16.msra.mxu1 %v4050_v30  ;;  %v4084_v30 = vld [vmem:[%s5138_s6 + $0x110] sm:$0xff]  }
 0x4ba   :  { %3642 = vmatprep.subr.bf16.mxu1 %v4206_v1 }
 0x4bd   :  { %3643 = vmatpush3.bf16.msra.mxu1 %v4051_v31  ;;  %v4085_v31 = vld [vmem:[%s5138_s6 + $0x108] sm:$0xff]  }
 0x4be   :  { %3644 = vmatprep.subr.bf16.mxu1 %v4206_v1 }
 0x4c1   :  { %3645 = vmatpush3.bf16.msra.mxu1 %v4052_v32  ;;  %v4086_v32 = vld [vmem:[%s5138_s6 + $0x100] sm:$0xff]  }
 0x4c2   :  { %3646 = vmatprep.subr.bf16.mxu1 %v4206_v1 }
 0x4c5   :  { %3647 = vmatpush3.bf16.msra.mxu1 %v4053_v33 }
 0x4c6   :  { %3648 = vmatprep.subr.bf16.mxu1 %v4206_v1 }
 0x4c9   :  { %3649 = vmatpush3.bf16.msra.mxu1 %v4054_v34  ;;  %v2952_v34 = vld [vmem:[%s5139_s7 + $0x1] ss:$0 sm:$0xff] }
 0x4ca   :  { %3680 = vmatprep.subr.bf16.mxu1 %v4206_v1 }
 0x56c   :  { %v711_v36 = vpop.f32.mrf.mxu1 }
 0x56d   :  { %v712_v37 = vadd.f32 %v2876_v35, %v711_v36 }
 0x56e   :  { %v3632_v38 = vpop.f32.mrf.mxu1 }
 0x56f   :  { %v717_v40 = vpack.c.bf16 %v712_v37, %v712_v37 }
 0x570   :  { %v714_v41 = vpop.f32.mrf.mxu1 }
 0x571   :  { %3651 = vmatmul.mubr.bf16.vlgmr.msra.gmra.mxu1 %v717_v40  ;;  %v4087_v41 = vld [vmem:[%s5135_s3 + $0xf8] sm:$0xff]  }
 0x572   :  { %3681 = vmatpush3.bf16.msra.mxu1 %v4055_v39  ;;  %v3633_v42 = vpop.f32.mrf.mxu1  ;;  %3696 = vmatprep.mubr.msk.bf16.mxu1 %vm4207_vm1, %v4206_v1 }
 0x573   :  { %3682 = vmatprep.subr.bf16.mxu1 %v4206_v1 }
 0x576   :  { %3683 = vmatpush3.bf16.msra.mxu1 %v4056_v43  ;;  %v4088_v43 = vld [vmem:[%s5135_s3 + $0xf0] sm:$0xff]  }
 0x577   :  { %3684 = vmatprep.subr.bf16.mxu1 %v4206_v1 }
 0x57a   :  { %3685 = vmatpush3.bf16.msra.mxu1 %v4057_v44  ;;  %v4089_v44 = vld [vmem:[%s5135_s3 + $0xe8] sm:$0xff]  }
 0x57b   :  { %3686 = vmatprep.subr.bf16.mxu1 %v4206_v1 }
 0x57e   :  { %3687 = vmatpush3.bf16.msra.mxu1 %v4058_v45  ;;  %v4090_v45 = vld [vmem:[%s5135_s3 + $0xe0] sm:$0xff]  }
 0x57f   :  { %3688 = vmatprep.subr.bf16.mxu1 %v4206_v1 }
 0x582   :  { %3689 = vmatpush3.bf16.msra.mxu1 %v4059_v46  ;;  %v4091_v46 = vld [vmem:[%s5135_s3 + $0xd8] sm:$0xff]  }
 0x583   :  { %3690 = vmatprep.subr.bf16.mxu1 %v4206_v1 }
 0x586   :  { %3691 = vmatpush3.bf16.msra.mxu1 %v4060_v47  ;;  %v4092_v47 = vld [vmem:[%s5135_s3 + $0xd0] sm:$0xff]  }
 0x587   :  { %3692 = vmatprep.subr.bf16.mxu1 %v4206_v1 }
 0x58a   :  { %3693 = vmatpush3.bf16.msra.mxu1 %v4061_v48  ;;  %v4093_v48 = vld [vmem:[%s5135_s3 + $0xc8] sm:$0xff]  }
 0x58b   :  { %3694 = vmatprep.subr.bf16.mxu1 %v4206_v1 }
 0x58e   :  { %3695 = vmatpush3.bf16.msra.mxu1 %v4062_v49  ;;  %v4094_v49 = vld [vmem:[%s5135_s3 + $0xc0] sm:$0xff]  }
 0x58f   :  { %3720 = vmatprep.subr.bf16.mxu1 %v4206_v1 }
 0x591   :  { %3697 = vmatmul.mubr.bf16.vlgmr.msra.gmra.mxu1 %v717_v40 }
 0x592   :  { %3721 = vmatpush3.bf16.msra.mxu1 %v4063_v50  ;;  %3736 = vmatprep.mubr.msk.bf16.mxu1 %vm4207_vm1, %v4206_v1 }
 0x593   :  { %3722 = vmatprep.subr.bf16.mxu1 %v4206_v1 }
 0x596   :  { %3723 = vmatpush3.bf16.msra.mxu1 %v4064_v51  ;;  %v3001_v51 = vld [vmem:[%s5139_s7 + $0x4] ss:$0 sm:$0xff] }
 0x597   :  { %3724 = vmatprep.subr.bf16.mxu1 %v4206_v1 }
 0x59a   :  { %3725 = vmatpush3.bf16.msra.mxu1 %v4065_v52 }
 0x59b   :  { %3726 = vmatprep.subr.bf16.mxu1 %v4206_v1 }
 0x59e   :  { %3727 = vmatpush3.bf16.msra.mxu1 %v4066_v53 }
 0x59f   :  { %3728 = vmatprep.subr.bf16.mxu1 %v4206_v1 }
 0x5a2   :  { %3729 = vmatpush3.bf16.msra.mxu1 %v4067_v54 }
 0x5a3   :  { %3730 = vmatprep.subr.bf16.mxu1 %v4206_v1 }
 0x5a6   :  { %3731 = vmatpush3.bf16.msra.mxu1 %v4068_v55 }
 0x5a7   :  { %3732 = vmatprep.subr.bf16.mxu1 %v4206_v1 }
 0x5aa   :  { %3733 = vmatpush3.bf16.msra.mxu1 %v4069_v56 }
 0x5ab   :  { %3734 = vmatprep.subr.bf16.mxu1 %v4206_v1 }
 0x5ae   :  { %3735 = vmatpush3.bf16.msra.mxu1 %v4070_v57 }
 0x5af   :  { %3760 = vmatprep.subr.bf16.mxu1 %v4206_v1 }
 0x5b1   :  { %3737 = vmatmul.mubr.bf16.vlgmr.msra.gmra.mxu1 %v4457_v19 }
 0x5b2   :  { %3762 = vmatprep.mubr.msk.bf16.mxu1 %vm4207_vm1, %v4206_v1 }
 0x631   :  { %v818_v58 = vpop.f32.mrf.mxu1 }
 0x632   :  { %v824_v59 = vpack.c.bf16 %v818_v58, %v818_v58 }
 0x633   :  { %v3652_v60 = vpop.f32.mrf.mxu1 }
 0x634   :  { %v830_v61 = vsel %vm39_vm0, %v824_v59, 0 }
 0x635   :  { %v821_v62 = vpop.f32.mrf.mxu1  ;;  %3655 = vmatpush3.bf16.msra.mxu0 %v830_v61 }
 0x636   :  { %3660 = vmatprep.subr.bf16.mxu0 %v4206_v1 }
 0x637   :  { %v3653_v0 = vpop.f32.mrf.mxu1 }
 0x638   :  { %3657 = vmatmul.mubr.msk.bf16.vlgmr.msra.gmra.mxu0 %vm35_vm2, %v4470_v27  ;;  %v4095_v0 = vld [vmem:[%s5135_s3 + $0x138] sm:$0xff]  }
 0x639   :  { %3661 = vmatpush3.bf16.msra.mxu0 %v4071_v63  ;;  %3676 = vmatprep.mubr.msk.bf16.mxu0 %vm4207_vm1, %v4206_v1 }
 0x63a   :  { %3662 = vmatprep.subr.bf16.mxu0 %v4206_v1 }
 0x63d   :  { %3663 = vmatpush3.bf16.msra.mxu0 %v4072_v2 }
 0x63e   :  { %3664 = vmatprep.subr.bf16.mxu0 %v4206_v1 }
 0x641   :  { %3665 = vmatpush3.bf16.msra.mxu0 %v4073_v3  ;;  %v4096_v3 = vld [vmem:[%s5135_s3 + $0x130] sm:$0xff]  }
 0x642   :  { %3666 = vmatprep.subr.bf16.mxu0 %v4206_v1 }
 0x645   :  { %3667 = vmatpush3.bf16.msra.mxu0 %v4074_v4  ;;  %v4097_v4 = vld [vmem:[%s5135_s3 + $0x128] sm:$0xff]  }
 0x646   :  { %3668 = vmatprep.subr.bf16.mxu0 %v4206_v1 }
 0x649   :  { %3669 = vmatpush3.bf16.msra.mxu0 %v4075_v5  ;;  %v4098_v5 = vld [vmem:[%s5135_s3 + $0x120] sm:$0xff]  }
 0x64a   :  { %3670 = vmatprep.subr.bf16.mxu0 %v4206_v1 }
 0x64d   :  { %3671 = vmatpush3.bf16.msra.mxu0 %v4076_v6  ;;  %v4099_v6 = vld [vmem:[%s5135_s3 + $0x118] sm:$0xff]  }
 0x64e   :  { %3672 = vmatprep.subr.bf16.mxu0 %v4206_v1 }
 0x651   :  { %v1077_v8 = vpop.f32.mrf.mxu1  ;;  %3673 = vmatpush3.bf16.msra.mxu0 %v4077_v7  ;;  %v4100_v7 = vld [vmem:[%s5135_s3 + $0x110] sm:$0xff]  }
 0x652   :  { %3674 = vmatprep.subr.bf16.mxu0 %v4206_v1 }
 0x653   :  { %v3698_v9 = vpop.f32.mrf.mxu1 }
 0x654   :  { %v4102_v9 = vld [vmem:[%s5135_s3 + $0x100] sm:$0xff]  }
 0x655   :  { %v1080_v10 = vpop.f32.mrf.mxu1  ;;  %3675 = vmatpush3.bf16.msra.mxu0 %v4078_v16 }
 0x656   :  { %3700 = vmatprep.subr.bf16.mxu0 %v4206_v1  ;;  %v3026_v10 = vld [vmem:[%s5136_s4 + $0x4] ss:$0 sm:$0xff] }
 0x657   :  { %v3699_v11 = vpop.f32.mrf.mxu1 }
 0x671   :  { %v4613_v12 = vpop.f32.mrf.mxu1 }
 0x673   :  { %v3738_v13 = vpop.f32.mrf.mxu1 }
 0x675   :  { %v1298_v14 = vpop.f32.mrf.mxu1 }
 0x676   :  { %v4103_v14 = vld [vmem:[%s5137_s5 + $0xb8] sm:$0xff]  }
 0x677   :  { %v3739_v15 = vpop.f32.mrf.mxu1 }
 0x6f8   :  { %v866_v18 = vpop.f32.mrf.mxu0 }
 0x6f9   :  { %v867_v19 = vadd.f32 %v2902_v17, %v866_v18  ;;  %v4104_v18 = vld [vmem:[%s5137_s5 + $0xb0] sm:$0xff]  }
 0x6fa   :  { %v3658_v20 = vpop.f32.mrf.mxu0 }
 0x6fb   :  { %v872_v22 = vpack.c.bf16 %v867_v19, %v867_v19  ;;  %v4105_v19 = vld [vmem:[%s5137_s5 + $0xa8] sm:$0xff]   ;;  %v4106_v20 = vld [vmem:[%s5137_s5 + $0xa0] sm:$0xff]  }
 0x6fc   :  { %v869_v23 = vpop.f32.mrf.mxu0 }
 0x6fd   :  { %3677 = vmatmul.mubr.bf16.vlgmr.msra.gmra.mxu0 %v872_v22  ;;  %v4108_v22 = vld [vmem:[%s5137_s5 + $0x90] sm:$0xff]   ;;  %v4109_v23 = vld [vmem:[%s5137_s5 + $0x88] sm:$0xff]  }
 0x6fe   :  { %v3659_v24 = vpop.f32.mrf.mxu0  ;;  %3701 = vmatpush3.bf16.msra.mxu0 %v4079_v21  ;;  %3716 = vmatprep.mubr.msk.bf16.mxu0 %vm4207_vm1, %v4206_v1  ;;  %v4107_v21 = vld [vmem:[%s5137_s5 + $0x98] sm:$0xff]  }
 0x6ff   :  { %3702 = vmatprep.subr.bf16.mxu0 %v4206_v1  ;;  %v4110_v24 = vld [vmem:[%s5137_s5 + $0x80] sm:$0xff]  }
 0x702   :  { %3703 = vmatpush3.bf16.msra.mxu0 %v4080_v25 }
 0x703   :  { %3704 = vmatprep.subr.bf16.mxu0 %v4206_v1 }
 0x706   :  { %3705 = vmatpush3.bf16.msra.mxu0 %v4081_v26 }
 0x707   :  { %3706 = vmatprep.subr.bf16.mxu0 %v4206_v1 }
 0x70a   :  { %3707 = vmatpush3.bf16.msra.mxu0 %v4082_v28 }
 0x70b   :  { %3708 = vmatprep.subr.bf16.mxu0 %v4206_v1 }
 0x70e   :  { %3709 = vmatpush3.bf16.msra.mxu0 %v4083_v29 }
 0x70f   :  { %3710 = vmatprep.subr.bf16.mxu0 %v4206_v1 }
 0x712   :  { %3711 = vmatpush3.bf16.msra.mxu0 %v4084_v30 }
 0x713   :  { %3712 = vmatprep.subr.bf16.mxu0 %v4206_v1 }
 0x716   :  { %3713 = vmatpush3.bf16.msra.mxu0 %v4085_v31  ;;  %v4111_v31 = vld [vmem:[%s5138_s6 + $0xb8] sm:$0xff]  }
 0x717   :  { %3714 = vmatprep.subr.bf16.mxu0 %v4206_v1 }
 0x71a   :  { %3715 = vmatpush3.bf16.msra.mxu0 %v4086_v32 }
 0x71b   :  { %3740 = vmatprep.subr.bf16.mxu0 %v4206_v1 }
 0x7bd   :  { %v989_v33 = vpop.f32.mrf.mxu0 }
 0x7be   :  { %v1078_v35 = vadd.f32 %v1077_v8, %v989_v33  ;;  %v4101_v8 = vld [vmem:[%s5135_s3 + $0x108] sm:$0xff]   ;;  %v4112_v33 = vld [vmem:[%s5138_s6 + $0xb0] sm:$0xff]  }
 0x7bf   :  { %v3678_v36 = vpop.f32.mrf.mxu0 }
 0x7c0   :  { %v1088_v37 = vadd.f32 %v2952_v34, %v1078_v35  ;;  %v4113_v34 = vld [vmem:[%s5138_s6 + $0xa8] sm:$0xff]   ;;  %v4114_v35 = vld [vmem:[%s5138_s6 + $0xa0] sm:$0xff]   ;;  %v4115_v36 = vld [vmem:[%s5138_s6 + $0x98] sm:$0xff]  }
 0x7c1   :  { %v992_v38 = vpop.f32.mrf.mxu0 }
 0x7c2   :  { %v1089_v39 = vmax.f32 %v1088_v37, 0.0  ;;  %v4116_v37 = vld [vmem:[%s5138_s6 + $0x90] sm:$0xff]   ;;  %v4117_v38 = vld [vmem:[%s5138_s6 + $0x88] sm:$0xff]  }
 0x7c3   :  { %v3679_v40 = vpop.f32.mrf.mxu0 }
 0x7c4   :  { %v1090_v42 = vpack.c.bf16 %v1089_v39, %v1089_v39 }
 0x7c6   :  { %3717 = vmatmul.mubr.bf16.vlgmr.msra.gmra.mxu0 %v1090_v42 }
 0x7c7   :  { %3741 = vmatpush3.bf16.msra.mxu0 %v4087_v41  ;;  %3756 = vmatprep.mubr.msk.bf16.mxu0 %vm4207_vm1, %v4206_v1 }
 0x7c8   :  { %3742 = vmatprep.subr.bf16.mxu0 %v4206_v1 }
 0x7cb   :  { %3743 = vmatpush3.bf16.msra.mxu0 %v4088_v43  ;;  %v4118_v43 = vld [vmem:[%s5138_s6 + $0x80] sm:$0xff]  }
 0x7cc   :  { %3744 = vmatprep.subr.bf16.mxu0 %v4206_v1 }
 0x7cf   :  { %3745 = vmatpush3.bf16.msra.mxu0 %v4089_v44  ;;  %v3052_v44 = vld [vmem:[%s5136_s4 + $0x5] ss:$0 sm:$0xff] }
 0x7d0   :  { %3746 = vmatprep.subr.bf16.mxu0 %v4206_v1 }
 0x7d3   :  { %3747 = vmatpush3.bf16.msra.mxu0 %v4090_v45 }
 0x7d4   :  { %3748 = vmatprep.subr.bf16.mxu0 %v4206_v1 }
 0x7d7   :  { %3749 = vmatpush3.bf16.msra.mxu0 %v4091_v46 }
 0x7d8   :  { %3750 = vmatprep.subr.bf16.mxu0 %v4206_v1 }
 0x7db   :  { %3751 = vmatpush3.bf16.msra.mxu0 %v4092_v47 }
 0x7dc   :  { %3752 = vmatprep.subr.bf16.mxu0 %v4206_v1 }
 0x7df   :  { %3753 = vmatpush3.bf16.msra.mxu0 %v4093_v48  ;;  %v4119_v48 = vld [vmem:[%s5135_s3 + $0x178] sm:$0xff]  }
 0x7e0   :  { %3754 = vmatprep.subr.bf16.mxu0 %v4206_v1 }
 0x7e3   :  { %3755 = vmatpush3.bf16.msra.mxu0 %v4094_v49 }
 0x7e4   :  { %3786 = vmatprep.subr.bf16.mxu0 %v4206_v1 }
 0x886   :  { %v1207_v50 = vpop.f32.mrf.mxu0 }
 0x887   :  { %v1296_v52 = vadd.f32 %v4613_v12, %v1207_v50 }
 0x888   :  { %v3718_v53 = vpop.f32.mrf.mxu0 }
 0x889   :  { %v1306_v54 = vadd.f32 %v3001_v51, %v1296_v52  ;;  %v4120_v52 = vld [vmem:[%s5135_s3 + $0x170] sm:$0xff]   ;;  %v4121_v53 = vld [vmem:[%s5135_s3 + $0x168] sm:$0xff]  }
 0x88a   :  { %v1210_v55 = vpop.f32.mrf.mxu0 }
 0x88b   :  { %v1307_v56 = vmax.f32 %v1306_v54, 0.0  ;;  %v4122_v54 = vld [vmem:[%s5135_s3 + $0x160] sm:$0xff]   ;;  %v4123_v55 = vld [vmem:[%s5135_s3 + $0x158] sm:$0xff]  }
 0x88c   :  { %v3719_v57 = vpop.f32.mrf.mxu0 }
 0x88d   :  { %v4697_v58 = vpack.c.bf16 %v1307_v56, %v1307_v56  ;;  %v4124_v56 = vld [vmem:[%s5135_s3 + $0x150] sm:$0xff]   ;;  %v4125_v57 = vld [vmem:[%s5135_s3 + $0x148] sm:$0xff]  }
 0x88f   :  { %3757 = vmatmul.mubr.bf16.vlgmr.msra.gmra.mxu0 %v4697_v58 }
 0x890   :  { %3788 = vmatprep.mubr.msk.bf16.mxu0 %vm4207_vm1, %v4206_v1 }
 0x94f   :  { %v1409_v59 = vpop.f32.mrf.mxu0 }
 0x950   :  { %v1415_v60 = vpack.c.bf16 %v1409_v59, %v1409_v59  ;;  %v4126_v59 = vld [vmem:[%s5135_s3 + $0x140] sm:$0xff]  }
 0x951   :  { %v3758_v61 = vpop.f32.mrf.mxu0 }
 0x952   :  { %v1421_v62 = vsel %vm39_vm0, %v1415_v60, 0  ;;  %v3102_v61 = vld [vmem:[%s5139_s7 + $0x2] ss:$0 sm:$0xff] }
 0x953   :  { %v1412_v63 = vpop.f32.mrf.mxu0  ;;  %3761 = vmatpush3.bf16.msra.mxu1 %v1421_v62 }
 0x954   :  { %3766 = vmatprep.subr.bf16.mxu1 %v4206_v1 }
 0x955   :  { %v3759_v2 = vpop.f32.mrf.mxu0 }
 0x956   :  { %3763 = vmatmul.mubr.msk.bf16.vlgmr.msra.gmra.mxu1 %vm35_vm2, %v4470_v27 }
 0x957   :  { %3767 = vmatpush3.bf16.msra.mxu1 %v4095_v0  ;;  %3782 = vmatprep.mubr.msk.bf16.mxu1 %vm4207_vm1, %v4206_v1 }
 0x958   :  { %3768 = vmatprep.subr.bf16.mxu1 %v4206_v1 }
 0x95b   :  { %3769 = vmatpush3.bf16.msra.mxu1 %v4096_v3 }
 0x95c   :  { %3770 = vmatprep.subr.bf16.mxu1 %v4206_v1 }
 0x95f   :  { %3771 = vmatpush3.bf16.msra.mxu1 %v4097_v4 }
 0x960   :  { %3772 = vmatprep.subr.bf16.mxu1 %v4206_v1 }
 0x963   :  { %3773 = vmatpush3.bf16.msra.mxu1 %v4098_v5 }
 0x964   :  { %3774 = vmatprep.subr.bf16.mxu1 %v4206_v1 }
 0x967   :  { %3775 = vmatpush3.bf16.msra.mxu1 %v4099_v6 }
 0x968   :  { %3776 = vmatprep.subr.bf16.mxu1 %v4206_v1 }
 0x96b   :  { %3777 = vmatpush3.bf16.msra.mxu1 %v4100_v7 }
 0x96c   :  { %3778 = vmatprep.subr.bf16.mxu1 %v4206_v1 }
 0x96f   :  { %3779 = vmatpush3.bf16.msra.mxu1 %v4101_v8 }
 0x970   :  { %3780 = vmatprep.subr.bf16.mxu1 %v4206_v1 }
 0x973   :  { %3781 = vmatpush3.bf16.msra.mxu1 %v4102_v9 }
 0x974   :  { %3812 = vmatprep.subr.bf16.mxu1 %v4206_v1 }
 0xa16   :  { %v1457_v11 = vpop.f32.mrf.mxu1 }
 0xa17   :  { %v1458_v12 = vadd.f32 %v3026_v10, %v1457_v11  ;;  %v4127_v11 = vld [vmem:[%s5135_s3 + $0x1b8] sm:$0xff]  }
 0xa18   :  { %v3764_v13 = vpop.f32.mrf.mxu1 }
 0xa19   :  { %v1463_v15 = vpack.c.bf16 %v1458_v12, %v1458_v12  ;;  %v4128_v13 = vld [vmem:[%s5135_s3 + $0x1b0] sm:$0xff]  }
 0xa1a   :  { %v1460_v16 = vpop.f32.mrf.mxu1 }
 0xa1b   :  { %3783 = vmatmul.mubr.bf16.vlgmr.msra.gmra.mxu1 %v1463_v15  ;;  %v4131_v16 = vld [vmem:[%s5135_s3 + $0x198] sm:$0xff]  }
 0xa1c   :  { %3813 = vmatpush3.bf16.msra.mxu1 %v4103_v14  ;;  %v3765_v17 = vpop.f32.mrf.mxu1  ;;  %3828 = vmatprep.mubr.msk.bf16.mxu1 %vm4207_vm1, %v4206_v1  ;;  %v4129_v14 = vld [vmem:[%s5135_s3 + $0x1a8] sm:$0xff]  }
 0xa1d   :  { %3814 = vmatprep.subr.bf16.mxu1 %v4206_v1  ;;  %v4132_v17 = vld [vmem:[%s5135_s3 + $0x190] sm:$0xff]  }
 0xa20   :  { %3815 = vmatpush3.bf16.msra.mxu1 %v4104_v18  ;;  %v4133_v18 = vld [vmem:[%s5135_s3 + $0x188] sm:$0xff]  }
 0xa21   :  { %3816 = vmatprep.subr.bf16.mxu1 %v4206_v1 }
 0xa24   :  { %3817 = vmatpush3.bf16.msra.mxu1 %v4105_v19  ;;  %v4134_v19 = vld [vmem:[%s5135_s3 + $0x180] sm:$0xff]  }
 0xa25   :  { %3818 = vmatprep.subr.bf16.mxu1 %v4206_v1 }
 0xa28   :  { %3819 = vmatpush3.bf16.msra.mxu1 %v4106_v20  ;;  %v3127_v20 = vld [vmem:[%s5136_s4 + $0x6] ss:$0 sm:$0xff] }
 0xa29   :  { %3820 = vmatprep.subr.bf16.mxu1 %v4206_v1 }
 0xa2c   :  { %3821 = vmatpush3.bf16.msra.mxu1 %v4107_v21 }
 0xa2d   :  { %3822 = vmatprep.subr.bf16.mxu1 %v4206_v1 }
 0xa30   :  { %3823 = vmatpush3.bf16.msra.mxu1 %v4108_v22 }
 0xa31   :  { %3824 = vmatprep.subr.bf16.mxu1 %v4206_v1 }
 0xa34   :  { %3825 = vmatpush3.bf16.msra.mxu1 %v4109_v23 }
 0xa35   :  { %3826 = vmatprep.subr.bf16.mxu1 %v4206_v1 }
 0xa38   :  { %3827 = vmatpush3.bf16.msra.mxu1 %v4110_v24  ;;  %v4135_v24 = vld [vmem:[%s5137_s5 + $0xf8] sm:$0xff]  }
 0xa39   :  { %3852 = vmatprep.subr.bf16.mxu1 %v4206_v1 }
 0xa3b   :  { %3829 = vmatmul.mubr.bf16.vlgmr.msra.gmra.mxu1 %v1463_v15  ;;  %v4130_v15 = vld [vmem:[%s5135_s3 + $0x1a0] sm:$0xff]  }
 0xa3c   :  { %3854 = vmatprep.mubr.msk.bf16.mxu1 %vm4207_vm1, %v4206_v1 }
 0xadb   :  { %v1564_v25 = vpop.f32.mrf.mxu1 }
 0xadc   :  { %v1570_v26 = vpack.c.bf16 %v1564_v25, %v1564_v25 }
 0xadd   :  { %v3784_v28 = vpop.f32.mrf.mxu1 }
 0xade   :  { %v1576_v29 = vsel %vm39_vm0, %v1570_v26, 0 }
 0xadf   :  { %v1567_v30 = vpop.f32.mrf.mxu1  ;;  %3787 = vmatpush3.bf16.msra.mxu0 %v1576_v29  ;;  %v4136_v29 = vld [vmem:[%s5137_s5 + $0xf0] sm:$0xff]  }
 0xae0   :  { %3792 = vmatprep.subr.bf16.mxu0 %v4206_v1  ;;  %v4137_v30 = vld [vmem:[%s5137_s5 + $0xe8] sm:$0xff]  }
 0xae1   :  { %v3785_v32 = vpop.f32.mrf.mxu1 }
 0xae2   :  { %3789 = vmatmul.mubr.msk.bf16.vlgmr.msra.gmra.mxu0 %vm35_vm2, %v4470_v27  ;;  %v4139_v32 = vld [vmem:[%s5137_s5 + $0xd8] sm:$0xff]  }
 0xae3   :  { %3793 = vmatpush3.bf16.msra.mxu0 %v4111_v31  ;;  %3808 = vmatprep.mubr.msk.bf16.mxu0 %vm4207_vm1, %v4206_v1  ;;  %v4138_v31 = vld [vmem:[%s5137_s5 + $0xe0] sm:$0xff]  }
 0xae4   :  { %3794 = vmatprep.subr.bf16.mxu0 %v4206_v1 }
 0xae7   :  { %3795 = vmatpush3.bf16.msra.mxu0 %v4112_v33  ;;  %v4140_v33 = vld [vmem:[%s5137_s5 + $0xd0] sm:$0xff]  }
 0xae8   :  { %3796 = vmatprep.subr.bf16.mxu0 %v4206_v1 }
 0xaeb   :  { %3797 = vmatpush3.bf16.msra.mxu0 %v4113_v34  ;;  %v4141_v34 = vld [vmem:[%s5137_s5 + $0xc8] sm:$0xff]  }
 0xaec   :  { %3798 = vmatprep.subr.bf16.mxu0 %v4206_v1 }
 0xaef   :  { %3799 = vmatpush3.bf16.msra.mxu0 %v4114_v35  ;;  %v4142_v35 = vld [vmem:[%s5137_s5 + $0xc0] sm:$0xff]  }
 0xaf0   :  { %3800 = vmatprep.subr.bf16.mxu0 %v4206_v1 }
 0xaf3   :  { %3801 = vmatpush3.bf16.msra.mxu0 %v4115_v36  ;;  %v4143_v36 = vld [vmem:[%s5137_s5 + $0x178] sm:$0xff]  }
 0xaf4   :  { %3802 = vmatprep.subr.bf16.mxu0 %v4206_v1 }
 0xaf7   :  { %3803 = vmatpush3.bf16.msra.mxu0 %v4116_v37  ;;  %v4144_v37 = vld [vmem:[%s5137_s5 + $0x170] sm:$0xff]  }
 0xaf8   :  { %3804 = vmatprep.subr.bf16.mxu0 %v4206_v1 }
 0xafb   :  { %v1823_v39 = vpop.f32.mrf.mxu1  ;;  %3805 = vmatpush3.bf16.msra.mxu0 %v4117_v38  ;;  %v4145_v38 = vld [vmem:[%s5137_s5 + $0x168] sm:$0xff]  }
 0xafc   :  { %3806 = vmatprep.subr.bf16.mxu0 %v4206_v1 }
 0xafd   :  { %v3830_v40 = vpop.f32.mrf.mxu1 }
 0xafe   :  { %v4147_v40 = vld [vmem:[%s5137_s5 + $0x158] sm:$0xff]  }
 0xaff   :  { %v1826_v41 = vpop.f32.mrf.mxu1  ;;  %3807 = vmatpush3.bf16.msra.mxu0 %v4118_v43  ;;  %v4150_v43 = vld [vmem:[%s5137_s5 + $0x140] sm:$0xff]  }
 0xb00   :  { %3832 = vmatprep.subr.bf16.mxu0 %v4206_v1  ;;  %v4148_v41 = vld [vmem:[%s5137_s5 + $0x150] sm:$0xff]  }
 0xb01   :  { %v3831_v42 = vpop.f32.mrf.mxu1 }
 0xb02   :  { %v4149_v42 = vld [vmem:[%s5137_s5 + $0x148] sm:$0xff]  }
 0xba2   :  { %v1612_v45 = vpop.f32.mrf.mxu0 }
 0xba3   :  { %v1613_v46 = vadd.f32 %v3052_v44, %v1612_v45  ;;  %v4151_v44 = vld [vmem:[%s5137_s5 + $0x1b8] sm:$0xff]   ;;  %v4152_v45 = vld [vmem:[%s5137_s5 + $0x1b0] sm:$0xff]  }
 0xba4   :  { %v3790_v47 = vpop.f32.mrf.mxu0 }
 0xba5   :  { %v1618_v49 = vpack.c.bf16 %v1613_v46, %v1613_v46  ;;  %v4153_v46 = vld [vmem:[%s5137_s5 + $0x1a8] sm:$0xff]   ;;  %v4154_v47 = vld [vmem:[%s5137_s5 + $0x1a0] sm:$0xff]  }
 0xba6   :  { %v1615_v50 = vpop.f32.mrf.mxu0 }
 0xba7   :  { %3809 = vmatmul.mubr.bf16.vlgmr.msra.gmra.mxu0 %v1618_v49  ;;  %v4156_v49 = vld [vmem:[%s5137_s5 + $0x190] sm:$0xff]   ;;  %v4157_v50 = vld [vmem:[%s5137_s5 + $0x188] sm:$0xff]  }
 0xba8   :  { %v3791_v51 = vpop.f32.mrf.mxu0  ;;  %3833 = vmatpush3.bf16.msra.mxu0 %v4119_v48  ;;  %3848 = vmatprep.mubr.msk.bf16.mxu0 %vm4207_vm1, %v4206_v1  ;;  %v4155_v48 = vld [vmem:[%s5137_s5 + $0x198] sm:$0xff]  }
 0xba9   :  { %3834 = vmatprep.subr.bf16.mxu0 %v4206_v1  ;;  %v4158_v51 = vld [vmem:[%s5137_s5 + $0x180] sm:$0xff]  }
 0xbac   :  { %3835 = vmatpush3.bf16.msra.mxu0 %v4120_v52 }
 0xbad   :  { %3836 = vmatprep.subr.bf16.mxu0 %v4206_v1 }
 0xbb0   :  { %3837 = vmatpush3.bf16.msra.mxu0 %v4121_v53 }
 0xbb1   :  { %3838 = vmatprep.subr.bf16.mxu0 %v4206_v1 }
 0xbb4   :  { %3839 = vmatpush3.bf16.msra.mxu0 %v4122_v54 }
 0xbb5   :  { %3840 = vmatprep.subr.bf16.mxu0 %v4206_v1 }
 0xbb8   :  { %3841 = vmatpush3.bf16.msra.mxu0 %v4123_v55 }
 0xbb9   :  { %3842 = vmatprep.subr.bf16.mxu0 %v4206_v1 }
 0xbbc   :  { %3843 = vmatpush3.bf16.msra.mxu0 %v4124_v56 }
 0xbbd   :  { %3844 = vmatprep.subr.bf16.mxu0 %v4206_v1 }
 0xbc0   :  { %3845 = vmatpush3.bf16.msra.mxu0 %v4125_v57  ;;  %v4159_v57 = vld [vmem:[%s5138_s6 + $0xf8] sm:$0xff]  }
 0xbc1   :  { %3846 = vmatprep.subr.bf16.mxu0 %v4206_v1 }
 0xbc4   :  { %3847 = vmatpush3.bf16.msra.mxu0 %v4126_v59 }
 0xbc5   :  { %3878 = vmatprep.subr.bf16.mxu0 %v4206_v1 }
 0xc67   :  { %v1735_v60 = vpop.f32.mrf.mxu0 }
 0xc68   :  { %v1824_v62 = vadd.f32 %v1823_v39, %v1735_v60  ;;  %v4146_v39 = vld [vmem:[%s5137_s5 + $0x160] sm:$0xff]   ;;  %v4161_v60 = vld [vmem:[%s5138_s6 + $0xe8] sm:$0xff]  }
 0xc69   :  { %v3810_v63 = vpop.f32.mrf.mxu0 }
 0xc6a   :  { %v1834_v0 = vadd.f32 %v3102_v61, %v1824_v62  ;;  %v4163_v61 = vld [vmem:[%s5138_s6 + $0xd8] sm:$0xff]   ;;  %v4164_v62 = vld [vmem:[%s5138_s6 + $0xd0] sm:$0xff]   ;;  %v4165_v63 = vld [vmem:[%s5138_s6 + $0xc8] sm:$0xff]  }
 0xc6b   :  { %v1738_v2 = vpop.f32.mrf.mxu0 }
 0xc6c   :  { %v1835_v3 = vmax.f32 %v1834_v0, 0.0 }
 0xc6d   :  { %v3811_v4 = vpop.f32.mrf.mxu0 }
 0xc6e   :  { %v4857_v5 = vpack.c.bf16 %v1835_v3, %v1835_v3 }
 0xc70   :  { %3849 = vmatmul.mubr.bf16.vlgmr.msra.gmra.mxu0 %v4857_v5 }
 0xc71   :  { %3880 = vmatprep.mubr.msk.bf16.mxu0 %vm4207_vm1, %v4206_v1 }
 0xd30   :  { %v1937_v6 = vpop.f32.mrf.mxu0 }
 0xd31   :  { %v1943_v7 = vpack.c.bf16 %v1937_v6, %v1937_v6 }
 0xd32   :  { %v3850_v8 = vpop.f32.mrf.mxu0 }
 0xd33   :  { %v1949_v9 = vsel %vm39_vm0, %v1943_v7, 0 }
 0xd34   :  { %v1940_v10 = vpop.f32.mrf.mxu0  ;;  %3853 = vmatpush3.bf16.msra.mxu1 %v1949_v9  ;;  %v4166_v9 = vld [vmem:[%s5138_s6 + $0xc0] sm:$0xff]  }
 0xd35   :  { %3858 = vmatprep.subr.bf16.mxu1 %v4206_v1 }
 0xd36   :  { %v3851_v12 = vpop.f32.mrf.mxu0 }
 0xd37   :  { %3855 = vmatmul.mubr.msk.bf16.vlgmr.msra.gmra.mxu1 %vm35_vm2, %v4470_v27 }
 0xd38   :  { %3859 = vmatpush3.bf16.msra.mxu1 %v4127_v11  ;;  %3874 = vmatprep.mubr.msk.bf16.mxu1 %vm4207_vm1, %v4206_v1 }
 0xd39   :  { %3860 = vmatprep.subr.bf16.mxu1 %v4206_v1 }
 0xd3c   :  { %3861 = vmatpush3.bf16.msra.mxu1 %v4128_v13 }
 0xd3d   :  { %3862 = vmatprep.subr.bf16.mxu1 %v4206_v1 }
 0xd40   :  { %3863 = vmatpush3.bf16.msra.mxu1 %v4129_v14  ;;  %v3153_v14 = vld [vmem:[%s5136_s4 + $0x7] ss:$0 sm:$0xff] }
 0xd41   :  { %3864 = vmatprep.subr.bf16.mxu1 %v4206_v1 }
 0xd44   :  { %3865 = vmatpush3.bf16.msra.mxu1 %v4130_v15 }
 0xd45   :  { %3866 = vmatprep.subr.bf16.mxu1 %v4206_v1 }
 0xd48   :  { %3867 = vmatpush3.bf16.msra.mxu1 %v4131_v16 }
 0xd49   :  { %3868 = vmatprep.subr.bf16.mxu1 %v4206_v1 }
 0xd4c   :  { %3869 = vmatpush3.bf16.msra.mxu1 %v4132_v17 }
 0xd4d   :  { %3870 = vmatprep.subr.bf16.mxu1 %v4206_v1 }
 0xd50   :  { %3871 = vmatpush3.bf16.msra.mxu1 %v4133_v18  ;;  %v4167_v18 = vld [vmem:[%s5138_s6 + $0x178] sm:$0xff]  }
 0xd51   :  { %3872 = vmatprep.subr.bf16.mxu1 %v4206_v1 }
 0xd54   :  { %3873 = vmatpush3.bf16.msra.mxu1 %v4134_v19 }
 0xd55   :  { %3904 = vmatprep.subr.bf16.mxu1 %v4206_v1 }
 0xdf7   :  { %v1985_v21 = vpop.f32.mrf.mxu1 }
 0xdf8   :  { %v1986_v22 = vadd.f32 %v3127_v20, %v1985_v21 }
 0xdf9   :  { %v3856_v23 = vpop.f32.mrf.mxu1 }
 0xdfa   :  { %v1991_v25 = vpack.c.bf16 %v1986_v22, %v1986_v22  ;;  %v4168_v22 = vld [vmem:[%s5138_s6 + $0x170] sm:$0xff]   ;;  %v4169_v23 = vld [vmem:[%s5138_s6 + $0x168] sm:$0xff]  }
 0xdfb   :  { %v1988_v26 = vpop.f32.mrf.mxu1 }
 0xdfc   :  { %3875 = vmatmul.mubr.bf16.vlgmr.msra.gmra.mxu1 %v1991_v25  ;;  %v4172_v26 = vld [vmem:[%s5138_s6 + $0x150] sm:$0xff]  }
 0xdfd   :  { %3905 = vmatpush3.bf16.msra.mxu1 %v4135_v24  ;;  %v3857_v28 = vpop.f32.mrf.mxu1  ;;  %3920 = vmatprep.mubr.msk.bf16.mxu1 %vm4207_vm1, %v4206_v1  ;;  %v4170_v24 = vld [vmem:[%s5138_s6 + $0x160] sm:$0xff]  }
 0xdfe   :  { %3906 = vmatprep.subr.bf16.mxu1 %v4206_v1  ;;  %v4173_v28 = vld [vmem:[%s5138_s6 + $0x148] sm:$0xff]  }
 0xe01   :  { %3907 = vmatpush3.bf16.msra.mxu1 %v4136_v29  ;;  %v4174_v29 = vld [vmem:[%s5138_s6 + $0x140] sm:$0xff]  }
 0xe02   :  { %3908 = vmatprep.subr.bf16.mxu1 %v4206_v1 }
 0xe05   :  { %3909 = vmatpush3.bf16.msra.mxu1 %v4137_v30 }
 0xe06   :  { %3910 = vmatprep.subr.bf16.mxu1 %v4206_v1 }
 0xe09   :  { %3911 = vmatpush3.bf16.msra.mxu1 %v4138_v31  ;;  %v3203_v31 = vld [vmem:[%s5139_s7 + $0x3] ss:$0 sm:$0xff] }
 0xe0a   :  { %3912 = vmatprep.subr.bf16.mxu1 %v4206_v1 }
 0xe0d   :  { %3913 = vmatpush3.bf16.msra.mxu1 %v4139_v32 }
 0xe0e   :  { %3914 = vmatprep.subr.bf16.mxu1 %v4206_v1 }
 0xe11   :  { %3915 = vmatpush3.bf16.msra.mxu1 %v4140_v33 }
 0xe12   :  { %3916 = vmatprep.subr.bf16.mxu1 %v4206_v1 }
 0xe15   :  { %3917 = vmatpush3.bf16.msra.mxu1 %v4141_v34 }
 0xe16   :  { %3918 = vmatprep.subr.bf16.mxu1 %v4206_v1 }
 0xe19   :  { %3919 = vmatpush3.bf16.msra.mxu1 %v4142_v35 }
 0xe1a   :  { %3944 = vmatprep.subr.bf16.mxu1 %v4206_v1 }
 0xe1c   :  { %3921 = vmatmul.mubr.bf16.vlgmr.msra.gmra.mxu1 %v1991_v25  ;;  %v4171_v25 = vld [vmem:[%s5138_s6 + $0x158] sm:$0xff]  }
 0xe1d   :  { %3945 = vmatpush3.bf16.msra.mxu1 %v4143_v36  ;;  %3960 = vmatprep.mubr.msk.bf16.mxu1 %vm4207_vm1, %v4206_v1 }
 0xe1e   :  { %3946 = vmatprep.subr.bf16.mxu1 %v4206_v1 }
 0xe21   :  { %3947 = vmatpush3.bf16.msra.mxu1 %v4144_v37 }
 0xe22   :  { %3948 = vmatprep.subr.bf16.mxu1 %v4206_v1 }
 0xe25   :  { %3949 = vmatpush3.bf16.msra.mxu1 %v4145_v38  ;;  %v4175_v38 = vld [vmem:[%s5138_s6 + $0x1b8] sm:$0xff]  }
 0xe26   :  { %3950 = vmatprep.subr.bf16.mxu1 %v4206_v1 }
 0xe29   :  { %3951 = vmatpush3.bf16.msra.mxu1 %v4146_v39 }
 0xe2a   :  { %3952 = vmatprep.subr.bf16.mxu1 %v4206_v1 }
 0xe2d   :  { %3953 = vmatpush3.bf16.msra.mxu1 %v4147_v40  ;;  %v4176_v40 = vld [vmem:[%s5138_s6 + $0x1b0] sm:$0xff]  }
 0xe2e   :  { %3954 = vmatprep.subr.bf16.mxu1 %v4206_v1 }
 0xe31   :  { %3955 = vmatpush3.bf16.msra.mxu1 %v4148_v41  ;;  %v4177_v41 = vld [vmem:[%s5138_s6 + $0x1a8] sm:$0xff]  }
 0xe32   :  { %3956 = vmatprep.subr.bf16.mxu1 %v4206_v1 }
 0xe35   :  { %3957 = vmatpush3.bf16.msra.mxu1 %v4149_v42  ;;  %v4178_v42 = vld [vmem:[%s5138_s6 + $0x1a0] sm:$0xff]  }
 0xe36   :  { %3958 = vmatprep.subr.bf16.mxu1 %v4206_v1 }
 0xe39   :  { %3959 = vmatpush3.bf16.msra.mxu1 %v4150_v43  ;;  %v4179_v43 = vld [vmem:[%s5138_s6 + $0x198] sm:$0xff]  }
 0xe3a   :  { %3984 = vmatprep.subr.bf16.mxu1 %v4206_v1 }
 0xe3c   :  { %3961 = vmatmul.mubr.bf16.vlgmr.msra.gmra.mxu1 %v4857_v5 }
 0xe3d   :  { %3985 = vmatpush3.bf16.msra.mxu1 %v4151_v44  ;;  %4000 = vmatprep.mubr.msk.bf16.mxu1 %vm4207_vm1, %v4206_v1  ;;  %v4180_v44 = vld [vmem:[%s5138_s6 + $0x190] sm:$0xff]  }
 0xe3e   :  { %3986 = vmatprep.subr.bf16.mxu1 %v4206_v1 }
 0xe41   :  { %3987 = vmatpush3.bf16.msra.mxu1 %v4152_v45  ;;  %v4181_v45 = vld [vmem:[%s5138_s6 + $0x188] sm:$0xff]  }
 0xe42   :  { %3988 = vmatprep.subr.bf16.mxu1 %v4206_v1 }
 0xe45   :  { %3989 = vmatpush3.bf16.msra.mxu1 %v4153_v46  ;;  %v4182_v46 = vld [vmem:[%s5138_s6 + $0x180] sm:$0xff]  }
 0xe46   :  { %3990 = vmatprep.subr.bf16.mxu1 %v4206_v1 }
 0xe49   :  { %3991 = vmatpush3.bf16.msra.mxu1 %v4154_v47 }
 0xe4a   :  { %3992 = vmatprep.subr.bf16.mxu1 %v4206_v1 }
 0xe4d   :  { %3993 = vmatpush3.bf16.msra.mxu1 %v4155_v48  ;;  %v3252_v48 = vld [vmem:[%s5139_s7 + $0x5] ss:$0 sm:$0xff] }
 0xe4e   :  { %3994 = vmatprep.subr.bf16.mxu1 %v4206_v1 }
 0xe51   :  { %3995 = vmatpush3.bf16.msra.mxu1 %v4156_v49 }
 0xe52   :  { %3996 = vmatprep.subr.bf16.mxu1 %v4206_v1 }
 0xe55   :  { %3997 = vmatpush3.bf16.msra.mxu1 %v4157_v50 }
 0xe56   :  { %3998 = vmatprep.subr.bf16.mxu1 %v4206_v1 }
 0xe59   :  { %3999 = vmatpush3.bf16.msra.mxu1 %v4158_v51 }
 0xe5c   :  { %4001 = vmatmul.mubr.bf16.vlgmr.msra.gmra.mxu1 %v4697_v58  ;;  %v4160_v58 = vld [vmem:[%s5138_s6 + $0xf0] sm:$0xff]  }
 0xebc   :  { %v2092_v52 = vpop.f32.mrf.mxu1 }
 0xebd   :  { %v2098_v53 = vpack.c.bf16 %v2092_v52, %v2092_v52 }
 0xebe   :  { %v3876_v54 = vpop.f32.mrf.mxu1 }
 0xebf   :  { %v2104_v55 = vsel %vm39_vm0, %v2098_v53, 0 }
 0xec0   :  { %v2095_v56 = vpop.f32.mrf.mxu1  ;;  %3879 = vmatpush3.bf16.msra.mxu0 %v2104_v55 }
 0xec1   :  { %3884 = vmatprep.subr.bf16.mxu0 %v4206_v1  ;;  %v3301_v56 = vld [vmem:[%s5139_s7 + $0x6] ss:$0 sm:$0xff] }
 0xec2   :  { %v3877_v59 = vpop.f32.mrf.mxu1 }
 0xec3   :  { %3881 = vmatmul.mubr.msk.bf16.vlgmr.msra.gmra.mxu0 %vm35_vm2, %v4470_v27  ;;  %v4162_v27 = vld [vmem:[%s5138_s6 + $0xe0] sm:$0xff]   ;;  %s4208_s6 = smov [#allocation2]  }
 0xec4   :  { %3885 = vmatpush3.bf16.msra.mxu0 %v4159_v57  ;;  %3900 = vmatprep.mubr.msk.bf16.mxu0 %vm4207_vm1, %v4206_v1  ;;  %s2807_s12 = sshll.u32 %s4208_s6, 4  ;;  %s2808_s12 = int_to_ptr.vmem [resolvable:$true] %s2807_s12 }
 0xec5   :  { %3886 = vmatprep.subr.bf16.mxu0 %v4206_v1  ;;  %s4184_s13 = scalar_lea.vmem %s2808_s12, 128  ;;  %p4189_p1 = scmp.lt.s32.totalorder %s2808_s12, %s2808_s12 }
 0xec6   :  { %p4185_p0 = scmp.ne.s32.totalorder %s2808_s12, %s4184_s13  ;;  %p4190_p2 = scmp.lt.s32.totalorder %s4184_s13, %s4184_s13 }
 0xec8   :  { %3887 = vmatpush3.bf16.msra.mxu0 %v4160_v58  ;;  %p4191_p3 = por %p4190_p2, %p4189_p1 }
 0xec9   :  { %3888 = vmatprep.subr.bf16.mxu0 %v4206_v1 }
 0xeca   :  { %p4192_p4 = pnand %p4191_p3, %p4185_p0 }
 0xecc   :  { %3889 = vmatpush3.bf16.msra.mxu0 %v4161_v60 }
 0xecd   :  { %3890 = vmatprep.subr.bf16.mxu0 %v4206_v1 }
 0xed0   :  { %3891 = vmatpush3.bf16.msra.mxu0 %v4162_v27 }
 0xed1   :  { %3892 = vmatprep.subr.bf16.mxu0 %v4206_v1 }
 0xed4   :  { %3893 = vmatpush3.bf16.msra.mxu0 %v4163_v61 }
 0xed5   :  { %3894 = vmatprep.subr.bf16.mxu0 %v4206_v1 }
 0xed8   :  { %3895 = vmatpush3.bf16.msra.mxu0 %v4164_v62 }
 0xed9   :  { %3896 = vmatprep.subr.bf16.mxu0 %v4206_v1 }
 0xedc   :  { %v2351_v0 = vpop.f32.mrf.mxu1  ;;  %3897 = vmatpush3.bf16.msra.mxu0 %v4165_v63 }
 0xedd   :  { %3898 = vmatprep.subr.bf16.mxu0 %v4206_v1 }
 0xede   :  { %v3922_v2 = vpop.f32.mrf.mxu1 }
 0xee0   :  { %v2354_v3 = vpop.f32.mrf.mxu1  ;;  %3899 = vmatpush3.bf16.msra.mxu0 %v4166_v9 }
 0xee1   :  { %3924 = vmatprep.subr.bf16.mxu0 %v4206_v1 }
 0xee2   :  { %v3923_v4 = vpop.f32.mrf.mxu1 }
 0xefc   :  { %v5040_v5 = vpop.f32.mrf.mxu1 }
 0xefe   :  { %v3962_v6 = vpop.f32.mrf.mxu1 }
 0xf00   :  { %v2572_v7 = vpop.f32.mrf.mxu1 }
 0xf02   :  { %v3963_v8 = vpop.f32.mrf.mxu1 }
 0xf1c   :  { %v5046_v10 = vpop.f32.mrf.mxu1 }
 0xf1e   :  { %v4002_v11 = vpop.f32.mrf.mxu1 }
 0xf20   :  { %v2790_v12 = vpop.f32.mrf.mxu1 }
 0xf22   :  { %v4003_v13 = vpop.f32.mrf.mxu1 }
 0xf83   :  { %v2140_v15 = vpop.f32.mrf.mxu0 }
 0xf84   :  { %v2141_v16 = vadd.f32 %v3153_v14, %v2140_v15 }
 0xf85   :  { %v3882_v17 = vpop.f32.mrf.mxu0 }
 0xf86   :  { %v2146_v19 = vpack.c.bf16 %v2141_v16, %v2141_v16 }
 0xf87   :  { %v2143_v20 = vpop.f32.mrf.mxu0 }
 0xf88   :  { %3901 = vmatmul.mubr.bf16.vlgmr.msra.gmra.mxu0 %v2146_v19 }
 0xf89   :  { %v3883_v21 = vpop.f32.mrf.mxu0  ;;  %3925 = vmatpush3.bf16.msra.mxu0 %v4167_v18  ;;  %3940 = vmatprep.mubr.msk.bf16.mxu0 %vm4207_vm1, %v4206_v1 }
 0xf8a   :  { %3926 = vmatprep.subr.bf16.mxu0 %v4206_v1 }
 0xf8d   :  { %3927 = vmatpush3.bf16.msra.mxu0 %v4168_v22 }
 0xf8e   :  { %3928 = vmatprep.subr.bf16.mxu0 %v4206_v1 }
 0xf91   :  { %3929 = vmatpush3.bf16.msra.mxu0 %v4169_v23 }
 0xf92   :  { %3930 = vmatprep.subr.bf16.mxu0 %v4206_v1 }
 0xf95   :  { %3931 = vmatpush3.bf16.msra.mxu0 %v4170_v24 }
 0xf96   :  { %3932 = vmatprep.subr.bf16.mxu0 %v4206_v1 }
 0xf99   :  { %3933 = vmatpush3.bf16.msra.mxu0 %v4171_v25 }
 0xf9a   :  { %3934 = vmatprep.subr.bf16.mxu0 %v4206_v1 }
 0xf9d   :  { %3935 = vmatpush3.bf16.msra.mxu0 %v4172_v26 }
 0xf9e   :  { %3936 = vmatprep.subr.bf16.mxu0 %v4206_v1 }
 0xfa1   :  { %3937 = vmatpush3.bf16.msra.mxu0 %v4173_v28 }
 0xfa2   :  { %3938 = vmatprep.subr.bf16.mxu0 %v4206_v1 }
 0xfa5   :  { %3939 = vmatpush3.bf16.msra.mxu0 %v4174_v29 }
 0xfa6   :  { %3964 = vmatprep.subr.bf16.mxu0 %v4206_v1 }
0x1048   :  { %v2263_v30 = vpop.f32.mrf.mxu0 }
0x1049   :  { %v2352_v32 = vadd.f32 %v2351_v0, %v2263_v30 }
0x104a   :  { %v3902_v33 = vpop.f32.mrf.mxu0 }
0x104b   :  { %v2362_v34 = vadd.f32 %v3203_v31, %v2352_v32 }
0x104c   :  { %v2266_v35 = vpop.f32.mrf.mxu0 }
0x104d   :  { %v2363_v36 = vmax.f32 %v2362_v34, 0.0 }
0x104e   :  { %v3903_v37 = vpop.f32.mrf.mxu0 }
0x104f   :  { %v2364_v39 = vpack.c.bf16 %v2363_v36, %v2363_v36 }
0x1051   :  { %3941 = vmatmul.mubr.bf16.vlgmr.msra.gmra.mxu0 %v2364_v39 }
0x1052   :  { %3965 = vmatpush3.bf16.msra.mxu0 %v4175_v38  ;;  %3980 = vmatprep.mubr.msk.bf16.mxu0 %vm4207_vm1, %v4206_v1 }
0x1053   :  { %3966 = vmatprep.subr.bf16.mxu0 %v4206_v1 }
0x1056   :  { %3967 = vmatpush3.bf16.msra.mxu0 %v4176_v40 }
0x1057   :  { %3968 = vmatprep.subr.bf16.mxu0 %v4206_v1 }
0x105a   :  { %3969 = vmatpush3.bf16.msra.mxu0 %v4177_v41 }
0x105b   :  { %3970 = vmatprep.subr.bf16.mxu0 %v4206_v1 }
0x105e   :  { %3971 = vmatpush3.bf16.msra.mxu0 %v4178_v42 }
0x105f   :  { %3972 = vmatprep.subr.bf16.mxu0 %v4206_v1 }
0x1062   :  { %3973 = vmatpush3.bf16.msra.mxu0 %v4179_v43 }
0x1063   :  { %3974 = vmatprep.subr.bf16.mxu0 %v4206_v1 }
0x1066   :  { %3975 = vmatpush3.bf16.msra.mxu0 %v4180_v44 }
0x1067   :  { %3976 = vmatprep.subr.bf16.mxu0 %v4206_v1 }
0x106a   :  { %3977 = vmatpush3.bf16.msra.mxu0 %v4181_v45 }
0x106b   :  { %3978 = vmatprep.subr.bf16.mxu0 %v4206_v1 }
0x106e   :  { %3979 = vmatpush3.bf16.msra.mxu0 %v4182_v46 }
0x1111   :  { %v2481_v47 = vpop.f32.mrf.mxu0 }
0x1112   :  { %v2570_v49 = vadd.f32 %v5040_v5, %v2481_v47 }
0x1113   :  { %v3942_v50 = vpop.f32.mrf.mxu0 }
0x1114   :  { %v2580_v51 = vadd.f32 %v3252_v48, %v2570_v49 }
0x1115   :  { %v2484_v52 = vpop.f32.mrf.mxu0 }
0x1116   :  { %v2581_v53 = vmax.f32 %v2580_v51, 0.0 }
0x1117   :  { %v3943_v54 = vpop.f32.mrf.mxu0 }
0x1118   :  { %v2582_v55 = vpack.c.bf16 %v2581_v53, %v2581_v53 }
0x111a   :  { %3981 = vmatmul.mubr.bf16.vlgmr.msra.gmra.mxu0 %v2582_v55 }
0x11da   :  { %v2699_v1 = vpop.f32.mrf.mxu0 }
0x11db   :  { %v2788_v57 = vadd.f32 %v5046_v10, %v2699_v1 }
0x11dc   :  { %v3982_v59 = vpop.f32.mrf.mxu0 }
0x11dd   :  { %v2798_v58 = vadd.f32 %v3301_v56, %v2788_v57 }
0x11de   :  { %v2702_v60 = vpop.f32.mrf.mxu0 }
0x11df   :  { %v2799_v27 = vmax.f32 %v2798_v58, 0.0 }
0x11e0   :  { %v3983_v61 = vpop.f32.mrf.mxu0 }
0x11e1   :  { %2800 = vst [vmem:[#allocation2] sm:$0xff] %v2799_v27 }
0x11e2   :  { %4195 = shalt.err (!%p4192_p4)
}
0x11e3   :  { %2810 = dma.vmem_to_hbm [thread:$0]  %s2808_s12, 128, %s5140_s8, [#allocation3]  }
0x11e4   :  { %4204 = dma.done.wait [#allocation3], 128  }
0x11e5   :  { %4205 = vsyncadd [#allocation3], 4294967168 }
0x11e6   :  { %2814 = vsyncpa [#allocation3], 1 }

</bundles_post_ra>
